<compile_context>
chip_gen: v7x
topology: tpu7x:2x2x1
jax: 0.10.0
libtpu: 0.0.40
codegen_flags: <defaults>
</compile_context>

<pallas_src>
import functools

import jax
import jax.numpy as jnp
import numpy as np
from jax.experimental import pallas as pl
from jax.experimental.pallas import tpu as pltpu


# ----------------------------------------------------------------------------- helpers
def _make_kernel_np(k):
    """Same as the PyTorch make_kernel: outer-product + normalize (float32)."""
    k = np.asarray(k, dtype=np.float32)
    if k.ndim == 1:
        k = np.outer(k, k)
    k = k / k.sum()
    return k


def _phase_taps(ksize, factor, pad0):
    """Per output phase along one axis: the FIR tap indices that hit non-zero
    (original-input) samples and the corresponding source offsets."""
    per_phase = []
    for p in range(factor):
        idx, off = [], []
        for i in range(ksize):
            if (p + i - pad0) % factor == 0:
                idx.append(i)
                off.append((p + i - pad0) // factor)  # exact (floor) division
        per_phase.append((tuple(idx), tuple(off)))
    return per_phase


@functools.lru_cache(maxsize=None)
def _device_config():
    """Return (two_tensorcores, tb_budget_bytes, vmem_limit_bytes) for the local TPU."""
    kind = ""
    try:
        kind = jax.devices()[0].device_kind.lower()
    except Exception:
        pass
    two_tc = "7" in kind                     # v7x-style chips: 2 TCs, 64 MiB VMEM / TC
    vmem = None
    try:
        vmem = int(pltpu.get_tpu_info().vmem_capacity_bytes)
    except Exception:
        vmem = None
    if not vmem or vmem < (32 << 20):
        vmem = (64 << 20) if two_tc else (128 << 20)
    vmem_limit = min((vmem * 3) // 4, vmem - (8 << 20))
    if two_tc:
        budget = 22 << 20                    # v7x: keep dbl-buffers + f32 temps < 48 MiB
    else:
        budget = min(60 << 20, (vmem_limit * 2) // 3)   # v5e/v6e: push toward roofline
    budget = max(4 << 20, min(budget, vmem_limit - (4 << 20)))
    return two_tc, int(budget), int(vmem_limit)


def _pick_tb(nc, per_img_bytes, budget_bytes, two_tc):
    """Largest divisor of nc whose working set fits the budget.  On 2-TC chips keep at
    least 2 grid steps and prefer an even grid length for core balance."""
    cap = max(1, int(budget_bytes // max(per_img_bytes, 1)))
    if two_tc and nc >= 2:
        cap = min(cap, nc // 2)
    cap = max(1, min(cap, nc))
    divisors = [d for d in range(1, cap + 1) if nc % d == 0]
    best = divisors[-1]
    if two_tc:
        even = [d for d in divisors if (nc // d) % 2 == 0]
        if even:
            best = even[-1]
    return best


# ------------------------------------------------------------------------------ kernel
def _upsample_fir_kernel(x_ref, out_ref, xe_ref, *, tap_table, factor, pt, pb, plw, pr,
                         fuse):
    """Polyphase upfirdn2d for one block of TB images.

    x_ref   : VMEM (TB, h, w)                original input block (input dtype)
    out_ref : VMEM (TB, h, factor*factor*w)  row-grouped output (layout set by `fuse`)
    xe_ref  : VMEM (TB, h+pt+pb, w+plw+pr)   zero-bordered staging scratch (input dtype)
    """
    tb, h, w = x_ref.shape
    f = factor
    H = h + pt + pb
    W = w + plw + pr
    zdt = xe_ref.dtype

    # --- stage the block: zero ONLY the border strips, then copy the interior ---
    if pt:
        xe_ref[:, 0:pt, :] = jnp.zeros((tb, pt, W), zdt)
    if pb:
        xe_ref[:, pt + h:H, :] = jnp.zeros((tb, pb, W), zdt)
    if plw:
        xe_ref[:, :, 0:plw] = jnp.zeros((tb, H, plw), zdt)
    if pr:
        xe_ref[:, :, plw + w:W] = jnp.zeros((tb, H, pr), zdt)
    xe_ref[:, pt:pt + h, plw:plw + w] = x_ref[...]

    def window(ro, co):
        # f32 cast happens here (at the multiply); the scratch stays in input dtype.
        return xe_ref[:, pt + ro:pt + ro + h, plw + co:plw + co + w].astype(jnp.float32)

    for py in range(f):
        cols = []
        for px in range(f):
            entries = tap_table[py][px]          # ((tap, row_off, col_off), ...)
            if entries:
                tap, ro, co = entries[0]
                acc = tap * window(ro, co)
                for tap, ro, co in entries[1:]:
                    acc = acc + tap * window(ro, co)
            else:
                acc = jnp.zeros((tb, h, w), jnp.float32)
            cols.append(acc)
        if fuse and f > 1:
            # x-phases interleaved along lanes: z = py*(f*w) + x*f + px.
            row = jnp.stack(cols, axis=-1).reshape(tb, h, f * w)
            out_ref[:, :, py * f * w:(py + 1) * f * w] = row.astype(out_ref.dtype)
        else:
            # phase-major: z = (py*f + px)*w + x (x-interleave done by XLA in wrapper).
            for px in range(f):
                z0 = (py * f + px) * w
                out_ref[:, :, z0:z0 + w] = cols[px].astype(out_ref.dtype)


# ----------------------------------------------------------------------------- wrapper
_FUSE_OK_CACHE = {}


def upsample(x, kernel_1d=(1, 3, 3, 1), factor=2):
    """Equivalent of Upsample(kernel_1d, factor).forward(x) for NCHW `x`."""
    n, c, h, w = x.shape
    nc = n * c
    f = int(factor)
    dtype = x.dtype

    # Static FIR setup (taps baked as Python float constants into the kernel).
    k = _make_kernel_np(kernel_1d) * (f ** 2)
    kh, kw = k.shape
    p = kh - f
    pad0 = (p + 1) // 2 + f - 1
    kflip = k[::-1, ::-1]

    taps_y = _phase_taps(kh, f, pad0)
    taps_x = _phase_taps(kw, f, pad0)
    offs_y = [o for _, offs in taps_y for o in offs] or [0]
    offs_x = [o for _, offs in taps_x for o in offs] or [0]
    pt, pb = max(0, -min(offs_y)), max(0, max(offs_y))
    plw, pr = max(0, -min(offs_x)), max(0, max(offs_x))

    tap_table = []
    for py in range(f):
        iy, oy = taps_y[py]
        row = []
        for px in range(f):
            ix, ox = taps_x[px]
            entries = []
            for i, ro in zip(iy, oy):
                for j, co in zip(ix, ox):
                    t = float(kflip[i, j])
                    if t != 0.0:
                        entries.append((t, ro, co))
            row.append(tuple(entries))
        tap_table.append(tuple(row))
    tap_table = tuple(tap_table)

    two_tc, budget, vmem_limit = _device_config()
    esize = dtype.itemsize
    # Per-image working set: double-buffered in/out blocks + staging scratch (input
    # dtype) + live in-kernel f32 accumulator / interleave / cast temporaries.
    per_img = (2 * h * w * esize
               + 2 * h * f * f * w * esize
               + (h + pt + pb) * (w + plw + pr) * esize
               + (3 * f * f) * h * w * 4)
    tb = _pick_tb(nc, per_img, budget, two_tc)

    x3 = x.reshape(nc, h, w)

    def build(fuse):
        kern = functools.partial(_upsample_fir_kernel, tap_table=tap_table, factor=f,
                                 pt=pt, pb=pb, plw=plw, pr=pr, fuse=fuse)

        def call(xin):
            return pl.pallas_call(
                kern,
                out_shape=jax.ShapeDtypeStruct((nc, h, f * f * w), dtype),
                grid=(nc // tb,),
                in_specs=[pl.BlockSpec((tb, h, w), lambda b: (b, 0, 0))],
                out_specs=pl.BlockSpec((tb, h, f * f * w), lambda b: (b, 0, 0)),
                scratch_shapes=[
                    pltpu.VMEM((tb, h + pt + pb, w + plw + pr), dtype)],
                compiler_params=pltpu.CompilerParams(
                    dimension_semantics=("parallel",),
                    vmem_limit_bytes=int(vmem_limit)),
            )(xin)

        return jax.jit(call)

    # Decide fused (in-kernel lane interleave -> free NCHW reshape) vs phase-major
    # (+ one XLA transpose) ONCE per configuration via a cached AOT lowering probe.
    kern_key = tuple(np.asarray(kernel_1d, np.float64).ravel().tolist())
    cfg_key = (kern_key, f, nc, h, w, str(dtype), tb)
    fused_fn = build(fuse=True)
    if cfg_key not in _FUSE_OK_CACHE:
        ok = True
        try:
            fused_fn.lower(jax.ShapeDtypeStruct((nc, h, w), dtype)).compile()
        except Exception:
            ok = False
        _FUSE_OK_CACHE[cfg_key] = ok

    if _FUSE_OK_CACHE[cfg_key]:
        out = fused_fn(x3)
        # z = py*(f*w) + x*f + px  ->  pure metadata reshape to NCHW.
        return out.reshape(n, c, h * f, w * f)

    # Fallback: phase-major kernel output, x-phase interleave via one XLA transpose.
    out = build(fuse=False)(x3)
    out = out.reshape(nc, h, f, f, w)
    out = jnp.swapaxes(out, 3, 4)            # (nc, h, py, x, px)
    return out.reshape(n, c, h * f, w * f)


# --------------------------------------------------------------------------- reference
def _reference_upfirdn2d(x, kernel_1d=(1, 3, 3, 1), factor=2):
    """Pure NumPy replica of upfirdn2d_native (up=factor, down=1) for verification."""
    k = np.asarray(kernel_1d, np.float32)
    if k.ndim == 1:
        k = k[None, :] * k[:, None]
    k = k / k.sum()
    k = k * (factor ** 2)
    kh, kw = k.shape
    p = kh - factor
    pad0 = (p + 1) // 2 + factor - 1
    pad1 = p // 2

    n, c, h, w = x.shape
    up = np.zeros((n, c, h * factor, w * factor), np.float32)
    up[:, :, ::factor, ::factor] = x
    xpad = np.pad(up, ((0, 0), (0, 0), (pad0, pad1), (pad0, pad1)))
    kflip = k[::-1, ::-1]
    oh = h * factor + pad0 + pad1 - kh + 1
    ow = w * factor + pad0 + pad1 - kw + 1
    out = np.zeros((n, c, oh, ow), np.float32)
    for i in range(kh):
        for j in range(kw):
            out += kflip[i, j] * xpad[:, :, i:i + oh, j:j + ow]
    return out


if __name__ == "__main__":
    key = jax.random.PRNGKey(0)
    n, c, h, w = 2, 4, 16, 16
    x = jax.random.normal(key, (n, c, h, w), dtype=jnp.float32)

    out = upsample(x, kernel_1d=(1, 3, 3, 1), factor=2)
    out = jax.block_until_ready(out)
    assert out.shape == (n, c, 2 * h, 2 * w), out.shape

    ref = _reference_upfirdn2d(np.asarray(x), kernel_1d=(1, 3, 3, 1), factor=2)
    np.testing.assert_allclose(np.asarray(out), ref, rtol=1e-5, atol=1e-5)

    print("KERNEL_OK")
</pallas_src>

<mosaic_0001>
module attributes {stable_mosaic.version = 11 : i64} {
  func.func @_upsample_fir_kernel(%arg0: i32, %arg1: memref<8x16x16xf32, #tpu.memory_space<vmem>>, %arg2: memref<8x16x64xf32, #tpu.memory_space<vmem>>, %arg3: memref<8x18x18xf32, #tpu.memory_space<vmem>>) attributes {dimension_semantics = [#tpu.dimension_semantics<parallel>], iteration_bounds = array<i64: 1>, scalar_prefetch = 0 : i64, scratch_operands = 1 : i64, tpu.core_type = #tpu.core_type<tc>, window_params = [{transform_indices = @transform_0, window_bounds = array<i64: 8, 16, 16>}, {transform_indices = @transform_1, window_bounds = array<i64: 8, 16, 64>}]} {
    %cst = arith.constant 0.000000e+00 : f32
    %0 = vector.broadcast %cst : f32 to vector<8x1x18xf32>
    %c0 = arith.constant 0 : index
    %c0_0 = arith.constant 0 : index
    %c0_1 = arith.constant 0 : index
    %1 = vector.load %arg3[%c0, %c0_0, %c0_1] : memref<8x18x18xf32, #tpu.memory_space<vmem>>, vector<8x1x18xf32>
    tpu.vector_store %arg3[%c0, %c0_0, %c0_1], %0 {strides = array<i32>} : memref<8x18x18xf32, #tpu.memory_space<vmem>>, vector<8x1x18xf32>,
    %cst_2 = arith.constant 0.000000e+00 : f32
    %2 = vector.broadcast %cst_2 : f32 to vector<8x1x18xf32>
    %c0_3 = arith.constant 0 : index
    %c17 = arith.constant 17 : index
    %c0_4 = arith.constant 0 : index
    %3 = vector.load %arg3[%c0_3, %c17, %c0_4] : memref<8x18x18xf32, #tpu.memory_space<vmem>>, vector<8x1x18xf32>
    tpu.vector_store %arg3[%c0_3, %c17, %c0_4], %2 {strides = array<i32>} : memref<8x18x18xf32, #tpu.memory_space<vmem>>, vector<8x1x18xf32>,
    %cst_5 = arith.constant 0.000000e+00 : f32
    %4 = vector.broadcast %cst_5 : f32 to vector<8x18x1xf32>
    %c0_6 = arith.constant 0 : index
    %c0_7 = arith.constant 0 : index
    %c0_8 = arith.constant 0 : index
    %5 = vector.load %arg3[%c0_6, %c0_7, %c0_8] : memref<8x18x18xf32, #tpu.memory_space<vmem>>, vector<8x18x1xf32>
    tpu.vector_store %arg3[%c0_6, %c0_7, %c0_8], %4 {strides = array<i32>} : memref<8x18x18xf32, #tpu.memory_space<vmem>>, vector<8x18x1xf32>,
    %cst_9 = arith.constant 0.000000e+00 : f32
    %6 = vector.broadcast %cst_9 : f32 to vector<8x18x1xf32>
    %c0_10 = arith.constant 0 : index
    %c0_11 = arith.constant 0 : index
    %c17_12 = arith.constant 17 : index
    %7 = vector.load %arg3[%c0_10, %c0_11, %c17_12] : memref<8x18x18xf32, #tpu.memory_space<vmem>>, vector<8x18x1xf32>
    tpu.vector_store %arg3[%c0_10, %c0_11, %c17_12], %6 {strides = array<i32>} : memref<8x18x18xf32, #tpu.memory_space<vmem>>, vector<8x18x1xf32>,
    %c0_13 = arith.constant 0 : index
    %c0_14 = arith.constant 0 : index
    %c0_15 = arith.constant 0 : index
    %8 = vector.load %arg1[%c0_13, %c0_14, %c0_15] : memref<8x16x16xf32, #tpu.memory_space<vmem>>, vector<8x16x16xf32>
    %c0_16 = arith.constant 0 : index
    %c1 = arith.constant 1 : index
    %c1_17 = arith.constant 1 : index
    %9 = vector.load %arg3[%c0_16, %c1, %c1_17] : memref<8x18x18xf32, #tpu.memory_space<vmem>>, vector<8x16x16xf32>
    tpu.vector_store %arg3[%c0_16, %c1, %c1_17], %8 {strides = array<i32>} : memref<8x18x18xf32, #tpu.memory_space<vmem>>, vector<8x16x16xf32>,
    %c0_18 = arith.constant 0 : index
    %c0_19 = arith.constant 0 : index
    %c0_20 = arith.constant 0 : index
    %10 = vector.load %arg3[%c0_18, %c0_19, %c0_20] : memref<8x18x18xf32, #tpu.memory_space<vmem>>, vector<8x16x16xf32>
    %cst_21 = arith.constant 6.250000e-02 : f32
    %11 = vector.broadcast %cst_21 : f32 to vector<8x16x16xf32>
    %12 = arith.mulf %11, %10 : vector<8x16x16xf32>
    %c0_22 = arith.constant 0 : index
    %c0_23 = arith.constant 0 : index
    %c1_24 = arith.constant 1 : index
    %13 = vector.load %arg3[%c0_22, %c0_23, %c1_24] : memref<8x18x18xf32, #tpu.memory_space<vmem>>, vector<8x16x16xf32>
    %cst_25 = arith.constant 1.875000e-01 : f32
    %14 = vector.broadcast %cst_25 : f32 to vector<8x16x16xf32>
    %15 = arith.mulf %14, %13 : vector<8x16x16xf32>
    %16 = arith.addf %12, %15 : vector<8x16x16xf32>
    %c0_26 = arith.constant 0 : index
    %c1_27 = arith.constant 1 : index
    %c0_28 = arith.constant 0 : index
    %17 = vector.load %arg3[%c0_26, %c1_27, %c0_28] : memref<8x18x18xf32, #tpu.memory_space<vmem>>, vector<8x16x16xf32>
    %cst_29 = arith.constant 1.875000e-01 : f32
    %18 = vector.broadcast %cst_29 : f32 to vector<8x16x16xf32>
    %19 = arith.mulf %18, %17 : vector<8x16x16xf32>
    %20 = arith.addf %16, %19 : vector<8x16x16xf32>
    %c0_30 = arith.constant 0 : index
    %c1_31 = arith.constant 1 : index
    %c1_32 = arith.constant 1 : index
    %21 = vector.load %arg3[%c0_30, %c1_31, %c1_32] : memref<8x18x18xf32, #tpu.memory_space<vmem>>, vector<8x16x16xf32>
    %cst_33 = arith.constant 5.625000e-01 : f32
    %22 = vector.broadcast %cst_33 : f32 to vector<8x16x16xf32>
    %23 = arith.mulf %22, %21 : vector<8x16x16xf32>
    %24 = arith.addf %20, %23 : vector<8x16x16xf32>
    %c0_34 = arith.constant 0 : index
    %c0_35 = arith.constant 0 : index
    %c1_36 = arith.constant 1 : index
    %25 = vector.load %arg3[%c0_34, %c0_35, %c1_36] : memref<8x18x18xf32, #tpu.memory_space<vmem>>, vector<8x16x16xf32>
    %cst_37 = arith.constant 1.875000e-01 : f32
    %26 = vector.broadcast %cst_37 : f32 to vector<8x16x16xf32>
    %27 = arith.mulf %26, %25 : vector<8x16x16xf32>
    %c0_38 = arith.constant 0 : index
    %c0_39 = arith.constant 0 : index
    %c2 = arith.constant 2 : index
    %28 = vector.load %arg3[%c0_38, %c0_39, %c2] : memref<8x18x18xf32, #tpu.memory_space<vmem>>, vector<8x16x16xf32>
    %cst_40 = arith.constant 6.250000e-02 : f32
    %29 = vector.broadcast %cst_40 : f32 to vector<8x16x16xf32>
    %30 = arith.mulf %29, %28 : vector<8x16x16xf32>
    %31 = arith.addf %27, %30 : vector<8x16x16xf32>
    %c0_41 = arith.constant 0 : index
    %c1_42 = arith.constant 1 : index
    %c1_43 = arith.constant 1 : index
    %32 = vector.load %arg3[%c0_41, %c1_42, %c1_43] : memref<8x18x18xf32, #tpu.memory_space<vmem>>, vector<8x16x16xf32>
    %cst_44 = arith.constant 5.625000e-01 : f32
    %33 = vector.broadcast %cst_44 : f32 to vector<8x16x16xf32>
    %34 = arith.mulf %33, %32 : vector<8x16x16xf32>
    %35 = arith.addf %31, %34 : vector<8x16x16xf32>
    %c0_45 = arith.constant 0 : index
    %c1_46 = arith.constant 1 : index
    %c2_47 = arith.constant 2 : index
    %36 = vector.load %arg3[%c0_45, %c1_46, %c2_47] : memref<8x18x18xf32, #tpu.memory_space<vmem>>, vector<8x16x16xf32>
    %cst_48 = arith.constant 1.875000e-01 : f32
    %37 = vector.broadcast %cst_48 : f32 to vector<8x16x16xf32>
    %38 = arith.mulf %37, %36 : vector<8x16x16xf32>
    %39 = arith.addf %35, %38 : vector<8x16x16xf32>
    %c0_49 = arith.constant 0 : index
    %c0_50 = arith.constant 0 : index
    %c0_51 = arith.constant 0 : index
    %40 = vector.load %arg2[%c0_49, %c0_50, %c0_51] : memref<8x16x64xf32, #tpu.memory_space<vmem>>, vector<8x16x16xf32>
    tpu.vector_store %arg2[%c0_49, %c0_50, %c0_51], %24 {strides = array<i32>} : memref<8x16x64xf32, #tpu.memory_space<vmem>>, vector<8x16x16xf32>,
    %c0_52 = arith.constant 0 : index
    %c0_53 = arith.constant 0 : index
    %c16 = arith.constant 16 : index
    %41 = vector.load %arg2[%c0_52, %c0_53, %c16] : memref<8x16x64xf32, #tpu.memory_space<vmem>>, vector<8x16x16xf32>
    tpu.vector_store %arg2[%c0_52, %c0_53, %c16], %39 {strides = array<i32>} : memref<8x16x64xf32, #tpu.memory_space<vmem>>, vector<8x16x16xf32>,
    %c0_54 = arith.constant 0 : index
    %c1_55 = arith.constant 1 : index
    %c0_56 = arith.constant 0 : index
    %42 = vector.load %arg3[%c0_54, %c1_55, %c0_56] : memref<8x18x18xf32, #tpu.memory_space<vmem>>, vector<8x16x16xf32>
    %cst_57 = arith.constant 1.875000e-01 : f32
    %43 = vector.broadcast %cst_57 : f32 to vector<8x16x16xf32>
    %44 = arith.mulf %43, %42 : vector<8x16x16xf32>
    %c0_58 = arith.constant 0 : index
    %c1_59 = arith.constant 1 : index
    %c1_60 = arith.constant 1 : index
    %45 = vector.load %arg3[%c0_58, %c1_59, %c1_60] : memref<8x18x18xf32, #tpu.memory_space<vmem>>, vector<8x16x16xf32>
    %cst_61 = arith.constant 5.625000e-01 : f32
    %46 = vector.broadcast %cst_61 : f32 to vector<8x16x16xf32>
    %47 = arith.mulf %46, %45 : vector<8x16x16xf32>
    %48 = arith.addf %44, %47 : vector<8x16x16xf32>
    %c0_62 = arith.constant 0 : index
    %c2_63 = arith.constant 2 : index
    %c0_64 = arith.constant 0 : index
    %49 = vector.load %arg3[%c0_62, %c2_63, %c0_64] : memref<8x18x18xf32, #tpu.memory_space<vmem>>, vector<8x16x16xf32>
    %cst_65 = arith.constant 6.250000e-02 : f32
    %50 = vector.broadcast %cst_65 : f32 to vector<8x16x16xf32>
    %51 = arith.mulf %50, %49 : vector<8x16x16xf32>
    %52 = arith.addf %48, %51 : vector<8x16x16xf32>
    %c0_66 = arith.constant 0 : index
    %c2_67 = arith.constant 2 : index
    %c1_68 = arith.constant 1 : index
    %53 = vector.load %arg3[%c0_66, %c2_67, %c1_68] : memref<8x18x18xf32, #tpu.memory_space<vmem>>, vector<8x16x16xf32>
    %cst_69 = arith.constant 1.875000e-01 : f32
    %54 = vector.broadcast %cst_69 : f32 to vector<8x16x16xf32>
    %55 = arith.mulf %54, %53 : vector<8x16x16xf32>
    %56 = arith.addf %52, %55 : vector<8x16x16xf32>
    %c0_70 = arith.constant 0 : index
    %c1_71 = arith.constant 1 : index
    %c1_72 = arith.constant 1 : index
    %57 = vector.load %arg3[%c0_70, %c1_71, %c1_72] : memref<8x18x18xf32, #tpu.memory_space<vmem>>, vector<8x16x16xf32>
    %cst_73 = arith.constant 5.625000e-01 : f32
    %58 = vector.broadcast %cst_73 : f32 to vector<8x16x16xf32>
    %59 = arith.mulf %58, %57 : vector<8x16x16xf32>
    %c0_74 = arith.constant 0 : index
    %c1_75 = arith.constant 1 : index
    %c2_76 = arith.constant 2 : index
    %60 = vector.load %arg3[%c0_74, %c1_75, %c2_76] : memref<8x18x18xf32, #tpu.memory_space<vmem>>, vector<8x16x16xf32>
    %cst_77 = arith.constant 1.875000e-01 : f32
    %61 = vector.broadcast %cst_77 : f32 to vector<8x16x16xf32>
    %62 = arith.mulf %61, %60 : vector<8x16x16xf32>
    %63 = arith.addf %59, %62 : vector<8x16x16xf32>
    %c0_78 = arith.constant 0 : index
    %c2_79 = arith.constant 2 : index
    %c1_80 = arith.constant 1 : index
    %64 = vector.load %arg3[%c0_78, %c2_79, %c1_80] : memref<8x18x18xf32, #tpu.memory_space<vmem>>, vector<8x16x16xf32>
    %cst_81 = arith.constant 1.875000e-01 : f32
    %65 = vector.broadcast %cst_81 : f32 to vector<8x16x16xf32>
    %66 = arith.mulf %65, %64 : vector<8x16x16xf32>
    %67 = arith.addf %63, %66 : vector<8x16x16xf32>
    %c0_82 = arith.constant 0 : index
    %c2_83 = arith.constant 2 : index
    %c2_84 = arith.constant 2 : index
    %68 = vector.load %arg3[%c0_82, %c2_83, %c2_84] : memref<8x18x18xf32, #tpu.memory_space<vmem>>, vector<8x16x16xf32>
    %cst_85 = arith.constant 6.250000e-02 : f32
    %69 = vector.broadcast %cst_85 : f32 to vector<8x16x16xf32>
    %70 = arith.mulf %69, %68 : vector<8x16x16xf32>
    %71 = arith.addf %67, %70 : vector<8x16x16xf32>
    %c0_86 = arith.constant 0 : index
    %c0_87 = arith.constant 0 : index
    %c32 = arith.constant 32 : index
    %72 = vector.load %arg2[%c0_86, %c0_87, %c32] : memref<8x16x64xf32, #tpu.memory_space<vmem>>, vector<8x16x16xf32>
    tpu.vector_store %arg2[%c0_86, %c0_87, %c32], %56 {strides = array<i32>} : memref<8x16x64xf32, #tpu.memory_space<vmem>>, vector<8x16x16xf32>,
    %c0_88 = arith.constant 0 : index
    %c0_89 = arith.constant 0 : index
    %c48 = arith.constant 48 : index
    %73 = vector.load %arg2[%c0_88, %c0_89, %c48] : memref<8x16x64xf32, #tpu.memory_space<vmem>>, vector<8x16x16xf32>
    tpu.vector_store %arg2[%c0_88, %c0_89, %c48], %71 {strides = array<i32>} : memref<8x16x64xf32, #tpu.memory_space<vmem>>, vector<8x16x16xf32>,
    return
  }
  func.func @transform_0(%arg0: i32) -> (i32, i32, i32) {
    %c0_i32 = arith.constant 0 : i32
    %c0_i32_0 = arith.constant 0 : i32
    %c0_i32_1 = arith.constant 0 : i32
    return %arg0, %c0_i32, %c0_i32_0 : i32, i32, i32
  }
  func.func @transform_1(%arg0: i32) -> (i32, i32, i32) {
    %c0_i32 = arith.constant 0 : i32
    %c0_i32_0 = arith.constant 0 : i32
    %c0_i32_1 = arith.constant 0 : i32
    return %arg0, %c0_i32, %c0_i32_0 : i32, i32, i32
  }
}

</mosaic_0001>

<bundles_post_ra>
// kernel: call.1
= control target key start
LH: loop header
LB: loop body
LE: loop exit
PB: predicated region body
PF: predicated region fallthrough
CT: control target
= control target key end

     0   :  { %6 = vsyncpa [#allocation4], 0  ;;  %s2527_s0 = inlined_call_operand.hbm [shape: f32[8,16,16], index: 0, kind: input, shape index: {}]   ;;  %s2528_s1 = inlined_call_operand.hbm [shape: f32[8,16,64], index: 1, kind: output, shape index: {}]  }
   0x1   :  { %7 = vsyncpa [#allocation5], 0  ;;  %s1420_s6 = smov [#allocation3]   ;;  %s1372_s10 = scalar_lea.hbm %s2527_s0, 2048 }
   0x2   :  { %s13_s7 = sshll.u32 %s1420_s6, 4  ;;  %p1373_p0 = scmp.ne.s32.totalorder %s2527_s0, %s1372_s10  ;;  %s14_s7 = int_to_ptr.vmem [resolvable:$true] %s13_s7 }
   0x3   :  { %p1376_p1 = scmp.lt.u32.totalorder %s1372_s10, %s2527_s0 }
   0x5   :  { %p1378_p2 = pnand %p1376_p1, %p1373_p0 }
   0x7   :  { %1381 = shalt.err (!%p1378_p2)
}
   0x8   :  { %s1382_s15 = scalar_lea.vmem %s14_s7, 2048  ;;  %p1387_p4 = scmp.lt.s32.totalorder %s14_s7, %s14_s7 }
   0x9   :  { %p1383_p3 = scmp.ne.s32.totalorder %s14_s7, %s1382_s15  ;;  %p1388_p5 = scmp.lt.s32.totalorder %s1382_s15, %s1382_s15 }
   0xb   :  { %p1389_p6 = por %p1388_p5, %p1387_p4 }
   0xd   :  { %p1390_p7 = pnand %p1389_p6, %p1383_p3 }
   0xf   :  { %1393 = shalt.err (!%p1390_p7)
}
  0x10   :  { %s1421_s16 = smov 128   ;;  %s1422_s17 = smov 8  }
  0x11   :  { %19 = dma.hbm_to_vmem [thread:$0]  %s2527_s0, 2048, %s14_s7, [#allocation4], %s1421_s16, %s1421_s16, %s1422_s17  }
  0x12   :  { %1416 = dma.done.wait [#allocation4], 2048  }
  0x13   :  { %1417 = vsyncadd [#allocation4], 4294965248  ;;  %vm23_vm0 = vcmask 139264   ;;  %vm40_vm1 = vcmask 7168   ;;  %vm66_vm2 = vcmask 146568   ;;  %v1423_v0 = vmov 0.0  }
  0x14   :  { %25 = vst.msk [vmem:[#allocation2 + $0x18] sm:$0x1] %vm23_vm0, %v1423_v0  ;;  %24 = vst.msk [vmem:[#allocation2] sm:$0x1] %vm23_vm0, %v1423_v0  ;;  %vm43_vm3 = vcmask 1024   ;;  %vm69_vm4 = vcmask 140424  }
  0x15   :  { %46 = vst.msk [vmem:[#allocation2 + $0x20] sm:$0xff] %vm40_vm1, %v1423_v0  ;;  %42 = vst.msk [vmem:[#allocation2 + $0x8] sm:$0xff] %vm40_vm1, %v1423_v0  ;;  %v94_v1 = vld [vmem:[#allocation3 + $0x10] sm:$0xff]  ;;  %v92_v2 = vld [vmem:[#allocation3] sm:$0xff]  ;;  %s1424_s0 = smov 1   ;;  %vm172_vm5 = vcmask 138248  }
  0x16   :  { %26 = vst.msk [vmem:[#allocation2 + $0x30] sm:$0x1] %vm23_vm0, %v1423_v0  ;;  %27 = vst.msk [vmem:[#allocation2 + $0x48] sm:$0x1] %vm23_vm0, %v1423_v0  ;;  %128 = vrot.lane.b32.xlu1 %v94_v1, %s1424_s0  ;;  %124 = vrot.lane.b32.xlu0 %v92_v2, %s1424_s0  ;;  %v95_v3 = vld [vmem:[#allocation3 + $0x18] sm:$0xff]  ;;  %v93_v4 = vld [vmem:[#allocation3 + $0x8] sm:$0xff] }
  0x17   :  { %28 = vst.msk [vmem:[#allocation2 + $0x60] sm:$0x1] %vm23_vm0, %v1423_v0  ;;  %29 = vst.msk [vmem:[#allocation2 + $0x78] sm:$0x1] %vm23_vm0, %v1423_v0  ;;  %v96_v5 = vld [vmem:[#allocation3 + $0x20] sm:$0xff]  ;;  %v97_v6 = vld [vmem:[#allocation3 + $0x28] sm:$0xff] }
  0x18   :  { %30 = vst.msk [vmem:[#allocation2 + $0x90] sm:$0x1] %vm23_vm0, %v1423_v0  ;;  %31 = vst.msk [vmem:[#allocation2 + $0xa8] sm:$0x1] %vm23_vm0, %v1423_v0  ;;  %v98_v7 = vld [vmem:[#allocation3 + $0x30] sm:$0xff]  ;;  %v99_v8 = vld [vmem:[#allocation3 + $0x38] sm:$0xff] }
  0x19   :  { %32 = vst.msk [vmem:[#allocation2 + $0x11] sm:$0x1] %vm23_vm0, %v1423_v0  ;;  %33 = vst.msk [vmem:[#allocation2 + $0x29] sm:$0x1] %vm23_vm0, %v1423_v0  ;;  %v100_v9 = vld [vmem:[#allocation3 + $0x40] sm:$0xff]  ;;  %v101_v10 = vld [vmem:[#allocation3 + $0x48] sm:$0xff] }
  0x1a   :  { %34 = vst.msk [vmem:[#allocation2 + $0x41] sm:$0x1] %vm23_vm0, %v1423_v0  ;;  %35 = vst.msk [vmem:[#allocation2 + $0x59] sm:$0x1] %vm23_vm0, %v1423_v0  ;;  %130 = vrot.lane.b32.xlu1 %v95_v3, %s1424_s0  ;;  %126 = vrot.lane.b32.xlu0 %v93_v4, %s1424_s0  ;;  %v102_v11 = vld [vmem:[#allocation3 + $0x50] sm:$0xff]  ;;  %v103_v12 = vld [vmem:[#allocation3 + $0x58] sm:$0xff] }
  0x1b   :  { %36 = vst.msk [vmem:[#allocation2 + $0x71] sm:$0x1] %vm23_vm0, %v1423_v0  ;;  %37 = vst.msk [vmem:[#allocation2 + $0x89] sm:$0x1] %vm23_vm0, %v1423_v0  ;;  %v104_v13 = vld [vmem:[#allocation3 + $0x60] sm:$0xff]  ;;  %v105_v14 = vld [vmem:[#allocation3 + $0x68] sm:$0xff] }
  0x1c   :  { %38 = vst.msk [vmem:[#allocation2 + $0xa1] sm:$0x1] %vm23_vm0, %v1423_v0  ;;  %39 = vst.msk [vmem:[#allocation2 + $0xb9] sm:$0x1] %vm23_vm0, %v1423_v0  ;;  %v106_v15 = vld [vmem:[#allocation3 + $0x70] sm:$0xff]  ;;  %v107_v16 = vld [vmem:[#allocation3 + $0x78] sm:$0xff] }
  0x1d   :  { %49 = vst.msk [vmem:[#allocation2 + $0x38] sm:$0xff] %vm40_vm1, %v1423_v0  ;;  %52 = vst.msk [vmem:[#allocation2 + $0x50] sm:$0xff] %vm40_vm1, %v1423_v0  ;;  %s1425_s20 = smov 127   ;;  %vm637_vm6 = vcmask 130048   ;;  %s1426_s21 = smov 15   ;;  %vm718_vm7 = vcmask 261248  }
  0x1e   :  { %55 = vst.msk [vmem:[#allocation2 + $0x68] sm:$0xff] %vm40_vm1, %v1423_v0  ;;  %58 = vst.msk [vmem:[#allocation2 + $0x80] sm:$0xff] %vm40_vm1, %v1423_v0  ;;  %132 = vrot.lane.b32.xlu0 %v96_v5, %s1424_s0  ;;  %134 = vrot.lane.b32.xlu1 %v97_v6, %s1424_s0  ;;  %s1427_s22 = smov 32   ;;  %s1428_s23 = smov 47   ;;  %vm1247_vm8 = vcmask 392448   ;;  %vm1328_vm9 = vcmask 523648  }
  0x1f   :  { %61 = vst.msk [vmem:[#allocation2 + $0x98] sm:$0xff] %vm40_vm1, %v1423_v0  ;;  %64 = vst.msk [vmem:[#allocation2 + $0xb0] sm:$0xff] %vm40_vm1, %v1423_v0  ;;  %s1429_s24 = smov [#allocation6]  }
  0x20   :  { %45 = vst.msk [vmem:[#allocation2 + $0x18] sm:$0xff] %vm40_vm1, %v1423_v0  ;;  %41 = vst.msk [vmem:[#allocation2] sm:$0xff] %vm40_vm1, %v1423_v0  ;;  %s1350_s25 = sshll.u32 %s1429_s24, 4  ;;  %s1351_s25 = int_to_ptr.vmem [resolvable:$true] %s1350_s25 }
  0x21   :  { %72 = vst.msk [vmem:[#allocation2 + $0x20] sm:$0xff] %vm66_vm2, %v1423_v0  ;;  %68 = vst.msk [vmem:[#allocation2 + $0x8] sm:$0xff] %vm66_vm2, %v1423_v0  ;;  %s1394_s26 = scalar_lea.vmem %s1351_s25, 2048  ;;  %p1399_p9 = scmp.lt.s32.totalorder %s1351_s25, %s1351_s25 }
  0x22   :  { %48 = vst.msk [vmem:[#allocation2 + $0x30] sm:$0xff] %vm40_vm1, %v1423_v0  ;;  %51 = vst.msk [vmem:[#allocation2 + $0x48] sm:$0xff] %vm40_vm1, %v1423_v0  ;;  %136 = vrot.lane.b32.xlu0 %v98_v7, %s1424_s0  ;;  %138 = vrot.lane.b32.xlu1 %v99_v8, %s1424_s0  ;;  %p1395_p8 = scmp.ne.s32.totalorder %s1351_s25, %s1394_s26  ;;  %p1400_p10 = scmp.lt.s32.totalorder %s1394_s26, %s1394_s26 }
  0x23   :  { %54 = vst.msk [vmem:[#allocation2 + $0x60] sm:$0xff] %vm40_vm1, %v1423_v0  ;;  %57 = vst.msk [vmem:[#allocation2 + $0x78] sm:$0xff] %vm40_vm1, %v1423_v0 }
  0x24   :  { %60 = vst.msk [vmem:[#allocation2 + $0x90] sm:$0xff] %vm40_vm1, %v1423_v0  ;;  %63 = vst.msk [vmem:[#allocation2 + $0xa8] sm:$0xff] %vm40_vm1, %v1423_v0  ;;  %p1401_p11 = por %p1400_p10, %p1399_p9 }
  0x25   :  { %75 = vst.msk [vmem:[#allocation2 + $0x38] sm:$0xff] %vm66_vm2, %v1423_v0  ;;  %78 = vst.msk [vmem:[#allocation2 + $0x50] sm:$0xff] %vm66_vm2, %v1423_v0 }
  0x26   :  { %81 = vst.msk [vmem:[#allocation2 + $0x68] sm:$0xff] %vm66_vm2, %v1423_v0  ;;  %84 = vst.msk [vmem:[#allocation2 + $0x80] sm:$0xff] %vm66_vm2, %v1423_v0  ;;  %140 = vrot.lane.b32.xlu0 %v100_v9, %s1424_s0  ;;  %142 = vrot.lane.b32.xlu1 %v101_v10, %s1424_s0  ;;  %p1402_p12 = pnand %p1401_p11, %p1395_p8 }
  0x27   :  { %87 = vst.msk [vmem:[#allocation2 + $0x98] sm:$0xff] %vm66_vm2, %v1423_v0  ;;  %90 = vst.msk [vmem:[#allocation2 + $0xb0] sm:$0xff] %vm66_vm2, %v1423_v0 }
  0x28   :  { %47 = vst.msk [vmem:[#allocation2 + $0x28] sm:$0x3] %vm43_vm3, %v1423_v0  ;;  %44 = vst.msk [vmem:[#allocation2 + $0x10] sm:$0x3] %vm43_vm3, %v1423_v0 }
  0x29   :  { %50 = vst.msk [vmem:[#allocation2 + $0x40] sm:$0x3] %vm43_vm3, %v1423_v0  ;;  %53 = vst.msk [vmem:[#allocation2 + $0x58] sm:$0x3] %vm43_vm3, %v1423_v0 }
  0x2a   :  { %56 = vst.msk [vmem:[#allocation2 + $0x70] sm:$0x3] %vm43_vm3, %v1423_v0  ;;  %59 = vst.msk [vmem:[#allocation2 + $0x88] sm:$0x3] %vm43_vm3, %v1423_v0  ;;  %144 = vrot.lane.b32.xlu0 %v102_v11, %s1424_s0  ;;  %146 = vrot.lane.b32.xlu1 %v103_v12, %s1424_s0 }
  0x2b   :  { %62 = vst.msk [vmem:[#allocation2 + $0xa0] sm:$0x3] %vm43_vm3, %v1423_v0  ;;  %65 = vst.msk [vmem:[#allocation2 + $0xb8] sm:$0x3] %vm43_vm3, %v1423_v0 }
  0x2c   :  { %71 = vst.msk [vmem:[#allocation2 + $0x18] sm:$0xff] %vm66_vm2, %v1423_v0  ;;  %67 = vst.msk [vmem:[#allocation2] sm:$0xff] %vm66_vm2, %v1423_v0 }
  0x2d   :  { %73 = vst.msk [vmem:[#allocation2 + $0x28] sm:$0x3] %vm69_vm4, %v1423_v0  ;;  %70 = vst.msk [vmem:[#allocation2 + $0x10] sm:$0x3] %vm69_vm4, %v1423_v0 }
  0x2e   :  { %74 = vst.msk [vmem:[#allocation2 + $0x30] sm:$0xff] %vm66_vm2, %v1423_v0  ;;  %77 = vst.msk [vmem:[#allocation2 + $0x48] sm:$0xff] %vm66_vm2, %v1423_v0  ;;  %148 = vrot.lane.b32.xlu0 %v104_v13, %s1424_s0  ;;  %150 = vrot.lane.b32.xlu1 %v105_v14, %s1424_s0 }
  0x2f   :  { %80 = vst.msk [vmem:[#allocation2 + $0x60] sm:$0xff] %vm66_vm2, %v1423_v0  ;;  %83 = vst.msk [vmem:[#allocation2 + $0x78] sm:$0xff] %vm66_vm2, %v1423_v0 }
  0x30   :  { %86 = vst.msk [vmem:[#allocation2 + $0x90] sm:$0xff] %vm66_vm2, %v1423_v0  ;;  %89 = vst.msk [vmem:[#allocation2 + $0xa8] sm:$0xff] %vm66_vm2, %v1423_v0 }
  0x31   :  { %76 = vst.msk [vmem:[#allocation2 + $0x40] sm:$0x3] %vm69_vm4, %v1423_v0  ;;  %79 = vst.msk [vmem:[#allocation2 + $0x58] sm:$0x3] %vm69_vm4, %v1423_v0 }
  0x32   :  { %82 = vst.msk [vmem:[#allocation2 + $0x70] sm:$0x3] %vm69_vm4, %v1423_v0  ;;  %85 = vst.msk [vmem:[#allocation2 + $0x88] sm:$0x3] %vm69_vm4, %v1423_v0  ;;  %152 = vrot.lane.b32.xlu0 %v106_v15, %s1424_s0  ;;  %154 = vrot.lane.b32.xlu1 %v107_v16, %s1424_s0 }
  0x33   :  { %88 = vst.msk [vmem:[#allocation2 + $0xa0] sm:$0x3] %vm69_vm4, %v1423_v0  ;;  %91 = vst.msk [vmem:[#allocation2 + $0xb8] sm:$0x3] %vm69_vm4, %v1423_v0 }
  0x88   :  { %v129_v17 = vpop.permute.xlu1 %128  ;;  %v125_v18 = vpop.permute.xlu0 %124 }
  0x89   :  { %175 = vst.msk [vmem:[#allocation2 + $0x19] sm:$0xff] %vm172_vm5, %v129_v17  ;;  %173 = vst.msk [vmem:[#allocation2 + $0x1] sm:$0xff] %vm172_vm5, %v125_v18 }
  0x8c   :  { %v131_v19 = vpop.permute.xlu1 %130  ;;  %v127_v20 = vpop.permute.xlu0 %126 }
  0x8d   :  { %176 = vst.msk [vmem:[#allocation2 + $0x21] sm:$0xff] %vm172_vm5, %v131_v19  ;;  %174 = vst.msk [vmem:[#allocation2 + $0x9] sm:$0xff] %vm172_vm5, %v127_v20 }
  0x90   :  { %v133_v21 = vpop.permute.xlu0 %132  ;;  %v1587_v22 = vld [vmem:[#allocation2] sm:$0xff]  ;;  %v135_v23 = vpop.permute.xlu1 %134  ;;  %v1589_v24 = vld [vmem:[#allocation2 + $0x18] sm:$0xff] }
  0x91   :  { %177 = vst.msk [vmem:[#allocation2 + $0x31] sm:$0xff] %vm172_vm5, %v133_v21  ;;  %v1593_v25 = vmul.f32 0.1875, %v1587_v22  ;;  %178 = vst.msk [vmem:[#allocation2 + $0x39] sm:$0xff] %vm172_vm5, %v135_v23  ;;  %v1599_v26 = vmul.f32 0.1875, %v1589_v24  ;;  %v1702_v0 = vld [vmem:[#allocation2 + $0x1] sm:$0xff]  ;;  %v1716_v4 = vld [vmem:[#allocation2 + $0x19] sm:$0xff] }
  0x92   :  { %v1712_v2 = vmul.f32 0.5625, %v1702_v0  ;;  %v1726_v6 = vmul.f32 0.5625, %v1716_v4 }
  0x93   :  { %253 = vrot.lane.b32.xlu0 %v1593_v25, %s1425_s20  ;;  %2593 = vst [vmem:[#allocation9_spill] sm:$0xff] %v1599_v26 }
  0x94   :  { %v137_v27 = vpop.permute.xlu0 %136  ;;  %v1601_v28 = vld [vmem:[#allocation2 + $0x8] sm:$0xff]  ;;  %v139_v29 = vpop.permute.xlu1 %138  ;;  %v1608_v31 = vld [vmem:[#allocation2 + $0x20] sm:$0xff]  ;;  %2607 = vst [vmem:[#allocation23_spill] sm:$0xff] %v1712_v2  ;;  %2609 = vst [vmem:[#allocation25_spill] sm:$0xff] %v1726_v6 }
  0x95   :  { %179 = vst.msk [vmem:[#allocation2 + $0x49] sm:$0xff] %vm172_vm5, %v137_v27  ;;  %v1605_v30 = vmul.f32 0.1875, %v1601_v28  ;;  %180 = vst.msk [vmem:[#allocation2 + $0x51] sm:$0xff] %vm172_vm5, %v139_v29  ;;  %v1620_v36 = vmul.f32 0.1875, %v1608_v31  ;;  %v1714_v3 = vld [vmem:[#allocation2 + $0x9] sm:$0xff]  ;;  %v1728_v7 = vld [vmem:[#allocation2 + $0x21] sm:$0xff] }
  0x96   :  { %v1723_v5 = vmul.f32 0.5625, %v1714_v3  ;;  %v1737_v9 = vmul.f32 0.5625, %v1728_v7 }
  0x97   :  { %255 = vrot.lane.b32.xlu1 %v1605_v30, %s1425_s20  ;;  %257 = vrot.lane.b32.xlu0 %v1599_v26, %s1425_s20  ;;  %2594 = vst [vmem:[#allocation10_spill] sm:$0xff] %v1620_v36 }
  0x98   :  { %v141_v32 = vpop.permute.xlu0 %140  ;;  %v1614_v33 = vld [vmem:[#allocation2 + $0x30] sm:$0xff]  ;;  %v143_v34 = vpop.permute.xlu1 %142  ;;  %v1616_v35 = vld [vmem:[#allocation2 + $0x38] sm:$0xff]  ;;  %2608 = vst [vmem:[#allocation24_spill] sm:$0xff] %v1723_v5  ;;  %2610 = vst [vmem:[#allocation26_spill] sm:$0xff] %v1737_v9 }
  0x99   :  { %181 = vst.msk [vmem:[#allocation2 + $0x61] sm:$0xff] %vm172_vm5, %v141_v32  ;;  %v1623_v37 = vmul.f32 0.1875, %v1614_v33  ;;  %182 = vst.msk [vmem:[#allocation2 + $0x69] sm:$0xff] %vm172_vm5, %v143_v34  ;;  %v1631_v38 = vmul.f32 0.1875, %v1616_v35  ;;  %v1730_v8 = vld [vmem:[#allocation2 + $0x31] sm:$0xff]  ;;  %v1742_v11 = vld [vmem:[#allocation2 + $0x39] sm:$0xff] }
  0x9a   :  { %v1740_v10 = vmul.f32 0.5625, %v1730_v8  ;;  %v1751_v13 = vmul.f32 0.5625, %v1742_v11 }
  0x9b   :  { %2595 = vst [vmem:[#allocation11_spill] sm:$0xff] %v1623_v37  ;;  %259 = vrot.lane.b32.xlu1 %v1620_v36, %s1425_s20  ;;  %261 = vrot.lane.b32.xlu0 %v1623_v37, %s1425_s20  ;;  %2596 = vst [vmem:[#allocation12_spill] sm:$0xff] %v1631_v38 }
  0x9c   :  { %v145_v39 = vpop.permute.xlu0 %144  ;;  %v1633_v40 = vld [vmem:[#allocation2 + $0x48] sm:$0xff]  ;;  %v147_v41 = vpop.permute.xlu1 %146  ;;  %v1635_v42 = vld [vmem:[#allocation2 + $0x50] sm:$0xff]  ;;  %2611 = vst [vmem:[#allocation27_spill] sm:$0xff] %v1740_v10  ;;  %2612 = vst [vmem:[#allocation28_spill] sm:$0xff] %v1751_v13 }
  0x9d   :  { %183 = vst.msk [vmem:[#allocation2 + $0x79] sm:$0xff] %vm172_vm5, %v145_v39  ;;  %v1639_v43 = vmul.f32 0.1875, %v1633_v40  ;;  %184 = vst.msk [vmem:[#allocation2 + $0x81] sm:$0xff] %vm172_vm5, %v147_v41  ;;  %v1647_v44 = vmul.f32 0.1875, %v1635_v42  ;;  %v1744_v12 = vld [vmem:[#allocation2 + $0x49] sm:$0xff]  ;;  %v1756_v15 = vld [vmem:[#allocation2 + $0x51] sm:$0xff] }
  0x9e   :  { %v1754_v14 = vmul.f32 0.5625, %v1744_v12  ;;  %v1765_v17 = vmul.f32 0.5625, %v1756_v15 }
  0x9f   :  { %2597 = vst [vmem:[#allocation13_spill] sm:$0xff] %v1639_v43  ;;  %263 = vrot.lane.b32.xlu1 %v1631_v38, %s1425_s20  ;;  %265 = vrot.lane.b32.xlu0 %v1639_v43, %s1425_s20  ;;  %2598 = vst [vmem:[#allocation14_spill] sm:$0xff] %v1647_v44 }
  0xa0   :  { %v149_v45 = vpop.permute.xlu0 %148  ;;  %v1649_v46 = vld [vmem:[#allocation2 + $0x60] sm:$0xff]  ;;  %v151_v47 = vpop.permute.xlu1 %150  ;;  %v1651_v48 = vld [vmem:[#allocation2 + $0x68] sm:$0xff]  ;;  %2613 = vst [vmem:[#allocation29_spill] sm:$0xff] %v1754_v14  ;;  %2614 = vst [vmem:[#allocation30_spill] sm:$0xff] %v1765_v17 }
  0xa1   :  { %185 = vst.msk [vmem:[#allocation2 + $0x91] sm:$0xff] %vm172_vm5, %v149_v45  ;;  %v1655_v49 = vmul.f32 0.1875, %v1649_v46  ;;  %186 = vst.msk [vmem:[#allocation2 + $0x99] sm:$0xff] %vm172_vm5, %v151_v47  ;;  %v1663_v50 = vmul.f32 0.1875, %v1651_v48  ;;  %v1758_v16 = vld [vmem:[#allocation2 + $0x61] sm:$0xff]  ;;  %v1770_v19 = vld [vmem:[#allocation2 + $0x69] sm:$0xff] }
  0xa2   :  { %v1768_v18 = vmul.f32 0.5625, %v1758_v16  ;;  %v1779_v21 = vmul.f32 0.5625, %v1770_v19 }
  0xa3   :  { %2599 = vst [vmem:[#allocation15_spill] sm:$0xff] %v1655_v49  ;;  %267 = vrot.lane.b32.xlu1 %v1647_v44, %s1425_s20  ;;  %269 = vrot.lane.b32.xlu0 %v1655_v49, %s1425_s20  ;;  %2600 = vst [vmem:[#allocation16_spill] sm:$0xff] %v1663_v50 }
  0xa4   :  { %v153_v51 = vpop.permute.xlu0 %152  ;;  %v1665_v52 = vld [vmem:[#allocation2 + $0x78] sm:$0xff]  ;;  %v155_v53 = vpop.permute.xlu1 %154  ;;  %v1667_v54 = vld [vmem:[#allocation2 + $0x80] sm:$0xff]  ;;  %2615 = vst [vmem:[#allocation31_spill] sm:$0xff] %v1768_v18  ;;  %2616 = vst [vmem:[#allocation32_spill] sm:$0xff] %v1779_v21 }
  0xa5   :  { %187 = vst.msk [vmem:[#allocation2 + $0xa9] sm:$0xff] %vm172_vm5, %v153_v51  ;;  %v1671_v55 = vmul.f32 0.1875, %v1665_v52  ;;  %188 = vst.msk [vmem:[#allocation2 + $0xb1] sm:$0xff] %vm172_vm5, %v155_v53  ;;  %v1679_v56 = vmul.f32 0.1875, %v1667_v54  ;;  %v1772_v20 = vld [vmem:[#allocation2 + $0x79] sm:$0xff]  ;;  %v1784_v27 = vld [vmem:[#allocation2 + $0x81] sm:$0xff] }
  0xa6   :  { %v1782_v23 = vmul.f32 0.5625, %v1772_v20  ;;  %v1793_v32 = vmul.f32 0.5625, %v1784_v27 }
  0xa7   :  { %2601 = vst [vmem:[#allocation17_spill] sm:$0xff] %v1671_v55  ;;  %271 = vrot.lane.b32.xlu1 %v1663_v50, %s1425_s20  ;;  %273 = vrot.lane.b32.xlu0 %v1671_v55, %s1425_s20  ;;  %2602 = vst [vmem:[#allocation18_spill] sm:$0xff] %v1679_v56  ;;  %v1959_v55 = vmul.f32 0.1875, %v1784_v27 }
  0xa8   :  { %v1681_v57 = vld [vmem:[#allocation2 + $0x90] sm:$0xff]  ;;  %v1683_v58 = vld [vmem:[#allocation2 + $0x98] sm:$0xff]  ;;  %2617 = vst [vmem:[#allocation33_spill] sm:$0xff] %v1782_v23  ;;  %2618 = vst [vmem:[#allocation34_spill] sm:$0xff] %v1793_v32 }
  0xa9   :  { %v1686_v59 = vmul.f32 0.1875, %v1681_v57  ;;  %v1693_v60 = vmul.f32 0.1875, %v1683_v58  ;;  %v1786_v29 = vld [vmem:[#allocation2 + $0x91] sm:$0xff]  ;;  %v1798_v39 = vld [vmem:[#allocation2 + $0x99] sm:$0xff] }
  0xaa   :  { %v1796_v34 = vmul.f32 0.5625, %v1786_v29  ;;  %v1807_v45 = vmul.f32 0.5625, %v1798_v39  ;;  %v1962_v50 = vmul.f32 0.1875, %v1786_v29  ;;  %v1969_v49 = vmul.f32 0.1875, %v1798_v39 }
  0xab   :  { %2603 = vst [vmem:[#allocation19_spill] sm:$0xff] %v1686_v59  ;;  %275 = vrot.lane.b32.xlu1 %v1679_v56, %s1425_s20  ;;  %277 = vrot.lane.b32.xlu0 %v1686_v59, %s1425_s20  ;;  %2604 = vst [vmem:[#allocation20_spill] sm:$0xff] %v1693_v60  ;;  %v1842_v59 = vmul.f32 0.0625, %v1614_v33  ;;  %v1862_v33 = vmul.f32 0.0625, %v1649_v46  ;;  %v1882_v46 = vmul.f32 0.0625, %v1681_v57  ;;  %v1902_v57 = vmul.f32 0.1875, %v1702_v0 }
  0xac   :  { %v1695_v61 = vld [vmem:[#allocation2 + $0xa8] sm:$0xff]  ;;  %v1697_v62 = vld [vmem:[#allocation2 + $0xb0] sm:$0xff]  ;;  %2619 = vst [vmem:[#allocation35_spill] sm:$0xff] %v1796_v34  ;;  %2620 = vst [vmem:[#allocation36_spill] sm:$0xff] %v1807_v45  ;;  %v1922_v0 = vmul.f32 0.1875, %v1730_v8  ;;  %v1942_v8 = vmul.f32 0.1875, %v1758_v16 }
  0xad   :  { %v1700_v63 = vmul.f32 0.1875, %v1695_v61  ;;  %v1709_v1 = vmul.f32 0.1875, %v1697_v62  ;;  %v1800_v41 = vld [vmem:[#allocation2 + $0xa9] sm:$0xff]  ;;  %v1812_v51 = vld [vmem:[#allocation2 + $0xb1] sm:$0xff]  ;;  %v1952_v56 = vmul.f32 0.1875, %v1772_v20 }
  0xae   :  { %v1810_v47 = vmul.f32 0.5625, %v1800_v41  ;;  %v1819_v53 = vmul.f32 0.5625, %v1812_v51  ;;  %v1972_v44 = vmul.f32 0.1875, %v1800_v41  ;;  %v1979_v43 = vmul.f32 0.1875, %v1812_v51 }
  0xaf   :  { %2605 = vst [vmem:[#allocation21_spill] sm:$0xff] %v1700_v63  ;;  %279 = vrot.lane.b32.xlu1 %v1693_v60, %s1425_s20  ;;  %281 = vrot.lane.b32.xlu0 %v1700_v63, %s1425_s20  ;;  %2606 = vst [vmem:[#allocation22_spill] sm:$0xff] %v1709_v1  ;;  %v1829_v63 = vmul.f32 0.0625, %v1601_v28  ;;  %v1832_v60 = vmul.f32 0.0625, %v1589_v24  ;;  %v1849_v24 = vmul.f32 0.0625, %v1616_v35  ;;  %v1852_v28 = vmul.f32 0.0625, %v1633_v40 }
  0xb0   :  { %2621 = vst [vmem:[#allocation37_spill] sm:$0xff] %v1810_v47  ;;  %2622 = vst [vmem:[#allocation38_spill] sm:$0xff] %v1819_v53  ;;  %v1869_v35 = vmul.f32 0.0625, %v1651_v48  ;;  %v1872_v40 = vmul.f32 0.0625, %v1665_v52  ;;  %v1889_v48 = vmul.f32 0.0625, %v1683_v58  ;;  %v1892_v52 = vmul.f32 0.0625, %v1695_v61 }
  0xb1   :  { %v1909_v58 = vmul.f32 0.1875, %v1714_v3  ;;  %v1912_v61 = vmul.f32 0.1875, %v1716_v4  ;;  %v1929_v3 = vmul.f32 0.1875, %v1742_v11  ;;  %v1932_v4 = vmul.f32 0.1875, %v1744_v12 }
  0xb2   :  { %v1949_v12 = vmul.f32 0.1875, %v1770_v19 }
  0xb3   :  { %283 = vrot.lane.b32.xlu1 %v1709_v1, %s1425_s20  ;;  %397 = vrot.lane.b32.xlu0 %v1712_v2, %s1425_s20  ;;  %v1822_v1 = vmul.f32 0.0625, %v1587_v22  ;;  %v1839_v22 = vmul.f32 0.0625, %v1608_v31  ;;  %v1859_v31 = vmul.f32 0.0625, %v1635_v42  ;;  %v1879_v42 = vmul.f32 0.0625, %v1667_v54 }
  0xb4   :  { %v1899_v54 = vmul.f32 0.0625, %v1697_v62  ;;  %v1919_v62 = vmul.f32 0.1875, %v1728_v7  ;;  %v1939_v7 = vmul.f32 0.1875, %v1756_v15 }
  0xb7   :  { %399 = vrot.lane.b32.xlu1 %v1723_v5, %s1425_s20  ;;  %401 = vrot.lane.b32.xlu0 %v1726_v6, %s1425_s20 }
  0xbb   :  { %403 = vrot.lane.b32.xlu1 %v1737_v9, %s1425_s20  ;;  %405 = vrot.lane.b32.xlu0 %v1740_v10, %s1425_s20 }
  0xbf   :  { %407 = vrot.lane.b32.xlu1 %v1751_v13, %s1425_s20  ;;  %409 = vrot.lane.b32.xlu0 %v1754_v14, %s1425_s20 }
  0xc3   :  { %411 = vrot.lane.b32.xlu1 %v1765_v17, %s1425_s20  ;;  %413 = vrot.lane.b32.xlu0 %v1768_v18, %s1425_s20 }
  0xc7   :  { %415 = vrot.lane.b32.xlu1 %v1779_v21, %s1425_s20  ;;  %417 = vrot.lane.b32.xlu0 %v1782_v23, %s1425_s20 }
  0xcb   :  { %419 = vrot.lane.b32.xlu1 %v1793_v32, %s1425_s20  ;;  %421 = vrot.lane.b32.xlu0 %v1796_v34, %s1425_s20 }
  0xcf   :  { %423 = vrot.lane.b32.xlu1 %v1807_v45, %s1425_s20  ;;  %425 = vrot.lane.b32.xlu0 %v1810_v47, %s1425_s20 }
  0xd3   :  { %427 = vrot.lane.b32.xlu1 %v1819_v53, %s1425_s20  ;;  %477 = vrot.lane.b32.xlu0 %v1822_v1, %s1425_s20 }
  0xd7   :  { %479 = vrot.lane.b32.xlu1 %v1829_v63, %s1425_s20  ;;  %481 = vrot.lane.b32.xlu0 %v1832_v60, %s1425_s20 }
  0xdb   :  { %483 = vrot.lane.b32.xlu1 %v1839_v22, %s1425_s20  ;;  %485 = vrot.lane.b32.xlu0 %v1842_v59, %s1425_s20 }
  0xdf   :  { %487 = vrot.lane.b32.xlu1 %v1849_v24, %s1425_s20  ;;  %489 = vrot.lane.b32.xlu0 %v1852_v28, %s1425_s20 }
  0xe3   :  { %491 = vrot.lane.b32.xlu1 %v1859_v31, %s1425_s20  ;;  %493 = vrot.lane.b32.xlu0 %v1862_v33, %s1425_s20 }
  0xe7   :  { %495 = vrot.lane.b32.xlu1 %v1869_v35, %s1425_s20  ;;  %497 = vrot.lane.b32.xlu0 %v1872_v40, %s1425_s20 }
  0xeb   :  { %499 = vrot.lane.b32.xlu1 %v1879_v42, %s1425_s20  ;;  %501 = vrot.lane.b32.xlu0 %v1882_v46, %s1425_s20 }
  0xef   :  { %503 = vrot.lane.b32.xlu1 %v1889_v48, %s1425_s20  ;;  %505 = vrot.lane.b32.xlu0 %v1892_v52, %s1425_s20 }
  0xf3   :  { %507 = vrot.lane.b32.xlu1 %v1899_v54, %s1425_s20  ;;  %573 = vrot.lane.b32.xlu0 %v1902_v57, %s1425_s20 }
  0xf7   :  { %575 = vrot.lane.b32.xlu1 %v1909_v58, %s1425_s20  ;;  %577 = vrot.lane.b32.xlu0 %v1912_v61, %s1425_s20 }
  0xfb   :  { %579 = vrot.lane.b32.xlu1 %v1919_v62, %s1425_s20  ;;  %581 = vrot.lane.b32.xlu0 %v1922_v0, %s1425_s20 }
  0xff   :  { %583 = vrot.lane.b32.xlu1 %v1929_v3, %s1425_s20  ;;  %585 = vrot.lane.b32.xlu0 %v1932_v4, %s1425_s20 }
 0x103   :  { %587 = vrot.lane.b32.xlu1 %v1939_v7, %s1425_s20  ;;  %589 = vrot.lane.b32.xlu0 %v1942_v8, %s1425_s20 }
 0x105   :  { %v254_v11 = vpop.permute.xlu0 %253 }
 0x107   :  { %591 = vrot.lane.b32.xlu1 %v1949_v12, %s1425_s20  ;;  %593 = vrot.lane.b32.xlu0 %v1952_v56, %s1425_s20 }
 0x109   :  { %v256_v15 = vpop.permute.xlu1 %255  ;;  %v258_v16 = vpop.permute.xlu0 %257 }
 0x10b   :  { %595 = vrot.lane.b32.xlu1 %v1959_v55, %s1425_s20  ;;  %597 = vrot.lane.b32.xlu0 %v1962_v50, %s1425_s20 }
 0x10d   :  { %v260_v19 = vpop.permute.xlu1 %259  ;;  %v262_v20 = vpop.permute.xlu0 %261 }
 0x10f   :  { %599 = vrot.lane.b32.xlu1 %v1969_v49, %s1425_s20  ;;  %601 = vrot.lane.b32.xlu0 %v1972_v44, %s1425_s20 }
 0x111   :  { %v264_v27 = vpop.permute.xlu1 %263  ;;  %v266_v29 = vpop.permute.xlu0 %265 }
 0x113   :  { %603 = vrot.lane.b32.xlu1 %v1979_v43, %s1425_s20  ;;  %799 = vrot.lane.b32.xlu0 %v1712_v2, %s1425_s20 }
 0x115   :  { %v268_v39 = vpop.permute.xlu1 %267  ;;  %v270_v41 = vpop.permute.xlu0 %269 }
 0x117   :  { %801 = vrot.lane.b32.xlu1 %v1723_v5, %s1425_s20  ;;  %803 = vrot.lane.b32.xlu0 %v1726_v6, %s1425_s20  ;;  %v301_v6 = vadd.f32 %v254_v11, %v1822_v1 }
 0x119   :  { %v272_v38 = vpop.permute.xlu1 %271  ;;  %v274_v37 = vpop.permute.xlu0 %273 }
 0x11b   :  { %805 = vrot.lane.b32.xlu1 %v1737_v9, %s1425_s20  ;;  %807 = vrot.lane.b32.xlu0 %v1740_v10, %s1425_s20  ;;  %v302_v10 = vadd.f32 %v256_v15, %v1829_v63  ;;  %v303_v9 = vadd.f32 %v258_v16, %v1832_v60 }
 0x11d   :  { %v1993_v51 = vpop.permute.xlu1 %275  ;;  %v1995_v36 = vpop.permute.xlu0 %277  ;;  %v350_v60 = vadd.f32 %v1909_v58, %v302_v10  ;;  %v351_v63 = vadd.f32 %v1912_v61, %v303_v9 }
 0x11f   :  { %809 = vrot.lane.b32.xlu1 %v1751_v13, %s1425_s20  ;;  %811 = vrot.lane.b32.xlu0 %v1754_v14, %s1425_s20  ;;  %v349_v13 = vadd.f32 %v1902_v57, %v301_v6 }
 0x121   :  { %v2002_v5 = vpop.permute.xlu1 %279  ;;  %v2004_v2 = vpop.permute.xlu0 %281 }
 0x123   :  { %813 = vrot.lane.b32.xlu1 %v1765_v17, %s1425_s20  ;;  %815 = vrot.lane.b32.xlu0 %v1768_v18, %s1425_s20  ;;  %v304_v17 = vadd.f32 %v260_v19, %v1839_v22  ;;  %v305_v18 = vadd.f32 %v262_v20, %v1842_v59  ;;  %v306_v22 = vadd.f32 %v264_v27, %v1849_v24 }
 0x124   :  { %v307_v59 = vadd.f32 %v266_v29, %v1852_v28  ;;  %v308_v24 = vadd.f32 %v268_v39, %v1859_v31  ;;  %v309_v28 = vadd.f32 %v270_v41, %v1862_v33  ;;  %v2051_v31 = vld [vmem:[#allocation2 + $0x1a] sm:$0xff]  ;;  %v310_v33 = vadd.f32 %v272_v38, %v1869_v35  ;;  %v2069_v35 = vld [vmem:[#allocation2 + $0x22] sm:$0xff] }
 0x125   :  { %v2013_v26 = vpop.permute.xlu1 %283  ;;  %v398_v1 = vpop.permute.xlu0 %397  ;;  %v352_v9 = vadd.f32 %v1919_v62, %v304_v17  ;;  %v353_v10 = vadd.f32 %v1922_v0, %v305_v18  ;;  %v354_v17 = vadd.f32 %v1929_v3, %v306_v22  ;;  %v311_v39 = vadd.f32 %v274_v37, %v1872_v40  ;;  %v2071_v37 = vld [vmem:[#allocation2 + $0x32] sm:$0xff] }
 0x126   :  { %v445_v11 = vadd.f32 %v398_v1, %v349_v13  ;;  %v355_v18 = vadd.f32 %v1932_v4, %v307_v59  ;;  %v356_v41 = vadd.f32 %v1939_v7, %v308_v24  ;;  %v312_v40 = vadd.f32 %v1993_v51, %v1879_v42 }
 0x127   :  { %817 = vrot.lane.b32.xlu1 %v1779_v21, %s1425_s20  ;;  %819 = vrot.lane.b32.xlu0 %v1782_v23, %s1425_s20 }
 0x128   :  { %638 = vst.msk [vmem:[#allocation6] sm:$0xff] %vm637_vm6, %v445_v11 }
 0x129   :  { %v400_v6 = vpop.permute.xlu1 %399  ;;  %v402_v15 = vpop.permute.xlu0 %401 }
 0x12a   :  { %v446_v16 = vadd.f32 %v400_v6, %v350_v60  ;;  %v447_v13 = vadd.f32 %v402_v15, %v351_v63  ;;  %v2034_v60 = vld [vmem:[#allocation2 + $0x2] sm:$0xff] }
 0x12b   :  { %821 = vrot.lane.b32.xlu1 %v1793_v32, %s1425_s20  ;;  %823 = vrot.lane.b32.xlu0 %v1796_v34, %s1425_s20  ;;  %v2047_v63 = vmul.f32 0.1875, %v2034_v60 }
 0x12c   :  { %639 = vst.msk [vmem:[#allocation6 + $0x8] sm:$0xff] %vm637_vm6, %v446_v16  ;;  %640 = vst.msk [vmem:[#allocation6 + $0x10] sm:$0xff] %vm637_vm6, %v447_v13  ;;  %v2049_v16 = vld [vmem:[#allocation2 + $0xa] sm:$0xff]  ;;  %v357_v13 = vadd.f32 %v1942_v8, %v309_v28 }
 0x12d   :  { %v404_v19 = vpop.permute.xlu1 %403  ;;  %v406_v20 = vpop.permute.xlu0 %405  ;;  %2623 = vst [vmem:[#allocation39_spill] sm:$0xff] %v2047_v63 }
 0x12e   :  { %v448_v1 = vadd.f32 %v404_v19, %v352_v9  ;;  %v449_v11 = vadd.f32 %v406_v20, %v353_v10  ;;  %v2064_v9 = vmul.f32 0.1875, %v2049_v16  ;;  %v2067_v10 = vmul.f32 0.1875, %v2051_v31 }
 0x12f   :  { %825 = vrot.lane.b32.xlu1 %v1807_v45, %s1425_s20  ;;  %827 = vrot.lane.b32.xlu0 %v1810_v47, %s1425_s20  ;;  %v313_v20 = vadd.f32 %v1995_v36, %v1882_v46  ;;  %v2093_v36 = vld [vmem:[#allocation2 + $0x4a] sm:$0xff]  ;;  %v314_v46 = vadd.f32 %v2002_v5, %v1889_v48 }
 0x130   :  { %641 = vst.msk [vmem:[#allocation6 + $0x18] sm:$0xff] %vm637_vm6, %v448_v1  ;;  %642 = vst.msk [vmem:[#allocation6 + $0x20] sm:$0xff] %vm637_vm6, %v449_v11  ;;  %v358_v1 = vadd.f32 %v1949_v12, %v310_v33  ;;  %v359_v11 = vadd.f32 %v1952_v56, %v311_v39 }
 0x131   :  { %v408_v27 = vpop.permute.xlu1 %407  ;;  %v410_v29 = vpop.permute.xlu0 %409  ;;  %2624 = vst [vmem:[#allocation40_spill] sm:$0xff] %v2064_v9  ;;  %2625 = vst [vmem:[#allocation41_spill] sm:$0xff] %v2067_v10 }
 0x132   :  { %v450_v6 = vadd.f32 %v408_v27, %v354_v17  ;;  %v451_v15 = vadd.f32 %v410_v29, %v355_v18  ;;  %v2086_v17 = vmul.f32 0.1875, %v2069_v35  ;;  %v2089_v18 = vmul.f32 0.1875, %v2071_v37  ;;  %v2091_v27 = vld [vmem:[#allocation2 + $0x3a] sm:$0xff]  ;;  %2628 = vst [vmem:[#allocation44_spill] sm:$0xff] %v2093_v36 }
 0x133   :  { %829 = vrot.lane.b32.xlu1 %v1819_v53, %s1425_s20  ;;  %943 = vrot.lane.b32.xlu0 %v2047_v63, %s1425_s20  ;;  %v315_v29 = vadd.f32 %v2004_v2, %v1892_v52  ;;  %v2115_v2 = vld [vmem:[#allocation2 + $0x62] sm:$0xff]  ;;  %v316_v52 = vadd.f32 %v2013_v26, %v1899_v54  ;;  %v2135_v26 = vld [vmem:[#allocation2 + $0x7a] sm:$0xff] }
 0x134   :  { %643 = vst.msk [vmem:[#allocation6 + $0x28] sm:$0xff] %vm637_vm6, %v450_v6  ;;  %644 = vst.msk [vmem:[#allocation6 + $0x30] sm:$0xff] %vm637_vm6, %v451_v15  ;;  %v360_v6 = vadd.f32 %v1959_v55, %v312_v40  ;;  %v361_v15 = vadd.f32 %v1962_v50, %v313_v20 }
 0x135   :  { %v412_v22 = vpop.permute.xlu1 %411  ;;  %v414_v59 = vpop.permute.xlu0 %413  ;;  %2626 = vst [vmem:[#allocation42_spill] sm:$0xff] %v2086_v17  ;;  %2627 = vst [vmem:[#allocation43_spill] sm:$0xff] %v2089_v18  ;;  %v364_v54 = vadd.f32 %v1979_v43, %v316_v52 }
 0x136   :  { %v452_v19 = vadd.f32 %v412_v22, %v356_v41  ;;  %v453_v38 = vadd.f32 %v414_v59, %v357_v13  ;;  %v2108_v41 = vmul.f32 0.1875, %v2091_v27  ;;  %v2111_v13 = vmul.f32 0.1875, %v2093_v36  ;;  %v2113_v22 = vld [vmem:[#allocation2 + $0x52] sm:$0xff]  ;;  %2632 = vst [vmem:[#allocation48_spill] sm:$0xff] %v2115_v2  ;;  %2636 = vst [vmem:[#allocation52_spill] sm:$0xff] %v2135_v26 }
 0x137   :  { %945 = vrot.lane.b32.xlu1 %v2064_v9, %s1425_s20  ;;  %947 = vrot.lane.b32.xlu0 %v2067_v10, %s1425_s20  ;;  %2631 = vst [vmem:[#allocation47_spill] sm:$0xff] %v2113_v22  ;;  %v362_v59 = vadd.f32 %v1969_v49, %v314_v46  ;;  %v2128_v20 = vmul.f32 0.1875, %v2113_v22  ;;  %v2650_v9 = vld [vmem:[#allocation23_spill] sm:$0xff]  ;;  %v2656_v22 = vld [vmem:[#allocation12_spill] sm:$0xff] }
 0x138   :  { %645 = vst.msk [vmem:[#allocation6 + $0x38] sm:$0xff] %vm637_vm6, %v452_v19  ;;  %646 = vst.msk [vmem:[#allocation6 + $0x40] sm:$0xff] %vm637_vm6, %v453_v38  ;;  %v363_v19 = vadd.f32 %v1972_v44, %v315_v29  ;;  %v2148_v29 = vmul.f32 0.1875, %v2135_v26 }
 0x139   :  { %v416_v24 = vpop.permute.xlu1 %415  ;;  %v418_v28 = vpop.permute.xlu0 %417  ;;  %2629 = vst [vmem:[#allocation45_spill] sm:$0xff] %v2108_v41  ;;  %2630 = vst [vmem:[#allocation46_spill] sm:$0xff] %v2111_v13 }
 0x13a   :  { %v454_v42 = vadd.f32 %v416_v24, %v358_v1  ;;  %v455_v51 = vadd.f32 %v418_v28, %v359_v11  ;;  %2633 = vst [vmem:[#allocation49_spill] sm:$0xff] %v2128_v20  ;;  %v2131_v1 = vmul.f32 0.1875, %v2115_v2  ;;  %v2133_v28 = vld [vmem:[#allocation2 + $0x6a] sm:$0xff]  ;;  %2638 = vst [vmem:[#allocation54_spill] sm:$0xff] %v2148_v29 }
 0x13b   :  { %949 = vrot.lane.b32.xlu1 %v2086_v17, %s1425_s20  ;;  %951 = vrot.lane.b32.xlu0 %v2089_v18, %s1425_s20  ;;  %2635 = vst [vmem:[#allocation51_spill] sm:$0xff] %v2133_v28  ;;  %v2145_v46 = vmul.f32 0.1875, %v2133_v28  ;;  %v2649_v17 = vld [vmem:[#allocation9_spill] sm:$0xff] }
 0x13c   :  { %647 = vst.msk [vmem:[#allocation6 + $0x48] sm:$0xff] %vm637_vm6, %v454_v42  ;;  %648 = vst.msk [vmem:[#allocation6 + $0x50] sm:$0xff] %vm637_vm6, %v455_v51  ;;  %v2654_v28 = vld [vmem:[#allocation25_spill] sm:$0xff] }
 0x13d   :  { %v420_v33 = vpop.permute.xlu1 %419  ;;  %v422_v39 = vpop.permute.xlu0 %421  ;;  %2634 = vst [vmem:[#allocation50_spill] sm:$0xff] %v2131_v1  ;;  %2637 = vst [vmem:[#allocation53_spill] sm:$0xff] %v2145_v46 }
 0x13e   :  { %v456_v5 = vadd.f32 %v420_v33, %v360_v6  ;;  %v457_v48 = vadd.f32 %v422_v39, %v361_v15  ;;  %v2150_v15 = vld [vmem:[#allocation2 + $0x82] sm:$0xff]  ;;  %v2152_v33 = vld [vmem:[#allocation2 + $0x92] sm:$0xff] }
 0x13f   :  { %953 = vrot.lane.b32.xlu1 %v2108_v41, %s1425_s20  ;;  %955 = vrot.lane.b32.xlu0 %v2111_v13, %s1425_s20  ;;  %2639 = vst [vmem:[#allocation55_spill] sm:$0xff] %v2150_v15  ;;  %2640 = vst [vmem:[#allocation56_spill] sm:$0xff] %v2152_v33  ;;  %v2163_v52 = vmul.f32 0.1875, %v2152_v33 }
 0x140   :  { %649 = vst.msk [vmem:[#allocation6 + $0x58] sm:$0xff] %vm637_vm6, %v456_v5  ;;  %650 = vst.msk [vmem:[#allocation6 + $0x60] sm:$0xff] %vm637_vm6, %v457_v48  ;;  %v2160_v48 = vmul.f32 0.1875, %v2150_v15  ;;  %v2652_v15 = vld [vmem:[#allocation11_spill] sm:$0xff] }
 0x141   :  { %v424_v38 = vpop.permute.xlu1 %423  ;;  %v426_v40 = vpop.permute.xlu0 %425  ;;  %2642 = vst [vmem:[#allocation58_spill] sm:$0xff] %v2163_v52 }
 0x142   :  { %v458_v11 = vadd.f32 %v424_v38, %v362_v59  ;;  %v459_v24 = vadd.f32 %v426_v40, %v363_v19  ;;  %2641 = vst [vmem:[#allocation57_spill] sm:$0xff] %v2160_v48  ;;  %v2165_v59 = vld [vmem:[#allocation2 + $0x9a] sm:$0xff]  ;;  %v2167_v19 = vld [vmem:[#allocation2 + $0xaa] sm:$0xff] }
 0x143   :  { %957 = vrot.lane.b32.xlu1 %v2128_v20, %s1425_s20  ;;  %959 = vrot.lane.b32.xlu0 %v2131_v1, %s1425_s20  ;;  %2643 = vst [vmem:[#allocation59_spill] sm:$0xff] %v2165_v59  ;;  %2644 = vst [vmem:[#allocation60_spill] sm:$0xff] %v2167_v19 }
 0x144   :  { %651 = vst.msk [vmem:[#allocation6 + $0x68] sm:$0xff] %vm637_vm6, %v458_v11  ;;  %652 = vst.msk [vmem:[#allocation6 + $0x70] sm:$0xff] %vm637_vm6, %v459_v24  ;;  %v2174_v11 = vmul.f32 0.1875, %v2165_v59  ;;  %v2177_v24 = vmul.f32 0.1875, %v2167_v19  ;;  %v2651_v59 = vld [vmem:[#allocation10_spill] sm:$0xff] }
 0x145   :  { %v428_v42 = vpop.permute.xlu1 %427  ;;  %v478_v51 = vpop.permute.xlu0 %477 }
 0x146   :  { %v460_v6 = vadd.f32 %v428_v42, %v364_v54  ;;  %2645 = vst [vmem:[#allocation61_spill] sm:$0xff] %v2174_v11  ;;  %2646 = vst [vmem:[#allocation62_spill] sm:$0xff] %v2177_v24  ;;  %v2179_v54 = vld [vmem:[#allocation2 + $0xb2] sm:$0xff]  ;;  %v525_v41 = vadd.f32 %v478_v51, %v1593_v25 }
 0x147   :  { %961 = vrot.lane.b32.xlu1 %v2145_v46, %s1425_s20  ;;  %963 = vrot.lane.b32.xlu0 %v2148_v29, %s1425_s20  ;;  %2647 = vst [vmem:[#allocation63_spill] sm:$0xff] %v2179_v54  ;;  %v2653_v25 = vld [vmem:[#allocation24_spill] sm:$0xff] }
 0x148   :  { %653 = vst.msk [vmem:[#allocation6 + $0x78] sm:$0xff] %vm637_vm6, %v460_v6  ;;  %v541_v63 = vadd.f32 %v525_v41, %v2650_v9  ;;  %v2655_v41 = vld [vmem:[#allocation26_spill] sm:$0xff] }
 0x149   :  { %v480_v39 = vpop.permute.xlu1 %479  ;;  %v482_v5 = vpop.permute.xlu0 %481 }
 0x14a   :  { %v527_v10 = vadd.f32 %v482_v5, %v2649_v17 }
 0x14b   :  { %965 = vrot.lane.b32.xlu1 %v2160_v48, %s1425_s20  ;;  %967 = vrot.lane.b32.xlu0 %v2163_v52, %s1425_s20  ;;  %v2186_v52 = vmul.f32 0.1875, %v2179_v54 }
 0x14c   :  { %v543_v2 = vadd.f32 %v527_v10, %v2654_v28 }
 0x14d   :  { %v484_v38 = vpop.permute.xlu1 %483  ;;  %v486_v40 = vpop.permute.xlu0 %485  ;;  %2648 = vst [vmem:[#allocation64_spill] sm:$0xff] %v2186_v52 }
 0x14e   :  { %v528_v33 = vadd.f32 %v484_v38, %v2651_v59  ;;  %v529_v26 = vadd.f32 %v486_v40, %v2652_v15  ;;  %v2658_v15 = vld [vmem:[#allocation27_spill] sm:$0xff] }
 0x14f   :  { %969 = vrot.lane.b32.xlu1 %v2174_v11, %s1425_s20  ;;  %971 = vrot.lane.b32.xlu0 %v2177_v24, %s1425_s20  ;;  %v526_v24 = vadd.f32 %v480_v39, %v1605_v30 }
 0x150   :  { %v544_v9 = vadd.f32 %v528_v33, %v2655_v41 }
 0x151   :  { %v488_v42 = vpop.permute.xlu1 %487  ;;  %v490_v6 = vpop.permute.xlu0 %489  ;;  %v542_v51 = vadd.f32 %v526_v24, %v2653_v25  ;;  %v2659_v24 = vld [vmem:[#allocation14_spill] sm:$0xff] }
 0x152   :  { %v530_v36 = vadd.f32 %v488_v42, %v2656_v22  ;;  %v2661_v22 = vld [vmem:[#allocation28_spill] sm:$0xff] }
 0x153   :  { %973 = vrot.lane.b32.xlu1 %v2186_v52, %s1425_s20 }
 0x154   :  { %v546_v33 = vadd.f32 %v530_v36, %v2661_v22 }
 0x155   :  { %v492_v48 = vpop.permute.xlu1 %491  ;;  %v494_v29 = vpop.permute.xlu0 %493 }
 0x156   :  { %v532_v28 = vadd.f32 %v492_v48, %v2659_v24 }
 0x159   :  { %v496_v46 = vpop.permute.xlu1 %495  ;;  %v498_v1 = vpop.permute.xlu0 %497 }
 0x15d   :  { %v500_v20 = vpop.permute.xlu1 %499  ;;  %v502_v13 = vpop.permute.xlu0 %501 }
 0x161   :  { %v504_v11 = vpop.permute.xlu1 %503  ;;  %v506_v18 = vpop.permute.xlu0 %505 }
 0x165   :  { %v2194_v54 = vpop.permute.xlu1 %507  ;;  %v574_v19 = vpop.permute.xlu0 %573 }
 0x166   :  { %v621_v52 = vadd.f32 %v574_v19, %v541_v63  ;;  %v2657_v63 = vld [vmem:[#allocation13_spill] sm:$0xff] }
 0x167   :  { %v531_v19 = vadd.f32 %v490_v6, %v2657_v63 }
 0x168   :  { %670 = vrot.lane.b32.xlu0 %v621_v52, %s1426_s21  ;;  %v545_v52 = vadd.f32 %v529_v26, %v2658_v15 }
 0x169   :  { %v576_v30 = vpop.permute.xlu1 %575  ;;  %v578_v39 = vpop.permute.xlu0 %577  ;;  %v547_v42 = vadd.f32 %v531_v19, %v1754_v14 }
 0x16a   :  { %v622_v17 = vadd.f32 %v576_v30, %v542_v51  ;;  %v623_v5 = vadd.f32 %v578_v39, %v543_v2  ;;  %v2660_v51 = vld [vmem:[#allocation15_spill] sm:$0xff] }
 0x16b   :  { %v533_v2 = vadd.f32 %v494_v29, %v2660_v51  ;;  %v2665_v29 = vld [vmem:[#allocation31_spill] sm:$0xff] }
 0x16c   :  { %672 = vrot.lane.b32.xlu1 %v622_v17, %s1426_s21  ;;  %674 = vrot.lane.b32.xlu0 %v623_v5, %s1426_s21  ;;  %v2662_v17 = vld [vmem:[#allocation30_spill] sm:$0xff]  ;;  %v2667_v51 = vld [vmem:[#allocation19_spill] sm:$0xff] }
 0x16d   :  { %v580_v59 = vpop.permute.xlu1 %579  ;;  %v582_v38 = vpop.permute.xlu0 %581  ;;  %v548_v5 = vadd.f32 %v532_v28, %v2662_v17  ;;  %v2679_v17 = vld [vmem:[#allocation60_spill] sm:$0xff] }
 0x16e   :  { %v624_v40 = vadd.f32 %v580_v59, %v544_v9  ;;  %v625_v10 = vadd.f32 %v582_v38, %v545_v52  ;;  %v2663_v9 = vld [vmem:[#allocation16_spill] sm:$0xff]  ;;  %v2664_v52 = vld [vmem:[#allocation17_spill] sm:$0xff]  ;;  %v549_v59 = vadd.f32 %v533_v2, %v2665_v29  ;;  %v2349_v14 = vmul.f32 0.0625, %v2679_v17 }
 0x16f   :  { %v534_v63 = vadd.f32 %v496_v46, %v2663_v9  ;;  %v535_v48 = vadd.f32 %v498_v1, %v2664_v52 }
 0x170   :  { %676 = vrot.lane.b32.xlu1 %v624_v40, %s1426_s21  ;;  %678 = vrot.lane.b32.xlu0 %v625_v10, %s1426_s21  ;;  %v2666_v10 = vld [vmem:[#allocation18_spill] sm:$0xff] }
 0x171   :  { %v584_v6 = vpop.permute.xlu1 %583  ;;  %v586_v30 = vpop.permute.xlu0 %585  ;;  %v536_v24 = vadd.f32 %v500_v20, %v2666_v10  ;;  %v550_v1 = vadd.f32 %v534_v63, %v1779_v21  ;;  %v551_v28 = vadd.f32 %v535_v48, %v1782_v23  ;;  %v2678_v21 = vld [vmem:[#allocation59_spill] sm:$0xff] }
 0x172   :  { %v626_v39 = vadd.f32 %v584_v6, %v546_v33  ;;  %v627_v26 = vadd.f32 %v586_v30, %v547_v42  ;;  %v537_v33 = vadd.f32 %v502_v13, %v2667_v51  ;;  %v2346_v29 = vmul.f32 0.0625, %v2678_v21  ;;  %v2680_v21 = vld [vmem:[#allocation63_spill] sm:$0xff] }
 0x173   :  { %v552_v30 = vadd.f32 %v536_v24, %v1793_v32  ;;  %v2677_v32 = vld [vmem:[#allocation56_spill] sm:$0xff]  ;;  %v2360_v15 = vmul.f32 0.0625, %v2680_v21 }
 0x174   :  { %680 = vrot.lane.b32.xlu1 %v626_v39, %s1426_s21  ;;  %682 = vrot.lane.b32.xlu0 %v627_v26, %s1426_s21  ;;  %v2668_v39 = vld [vmem:[#allocation20_spill] sm:$0xff]  ;;  %v553_v13 = vadd.f32 %v537_v33, %v1796_v34  ;;  %v2337_v23 = vmul.f32 0.0625, %v2677_v32 }
 0x175   :  { %v588_v38 = vpop.permute.xlu1 %587  ;;  %v590_v36 = vpop.permute.xlu0 %589  ;;  %v538_v26 = vadd.f32 %v504_v11, %v2668_v39 }
 0x176   :  { %v628_v40 = vadd.f32 %v588_v38, %v548_v5  ;;  %v629_v19 = vadd.f32 %v590_v36, %v549_v59  ;;  %v2669_v5 = vld [vmem:[#allocation21_spill] sm:$0xff]  ;;  %v2670_v59 = vld [vmem:[#allocation22_spill] sm:$0xff] }
 0x177   :  { %v539_v20 = vadd.f32 %v506_v18, %v2669_v5  ;;  %v540_v38 = vadd.f32 %v2194_v54, %v2670_v59  ;;  %v554_v11 = vadd.f32 %v538_v26, %v1807_v45  ;;  %v880_v59 = vmul.f32 0.0625, %v2049_v16  ;;  %v2671_v16 = vld [vmem:[#allocation44_spill] sm:$0xff] }
 0x178   :  { %684 = vrot.lane.b32.xlu1 %v628_v40, %s1426_s21  ;;  %686 = vrot.lane.b32.xlu0 %v629_v19, %s1426_s21 }
 0x179   :  { %v592_v46 = vpop.permute.xlu1 %591  ;;  %v594_v42 = vpop.permute.xlu0 %593  ;;  %v555_v18 = vadd.f32 %v539_v20, %v1810_v47  ;;  %v556_v24 = vadd.f32 %v540_v38, %v1819_v53  ;;  %v881_v38 = vmul.f32 0.0625, %v2051_v31  ;;  %v2674_v53 = vld [vmem:[#allocation51_spill] sm:$0xff] }
 0x17a   :  { %v630_v6 = vadd.f32 %v592_v46, %v550_v1  ;;  %v631_v2 = vadd.f32 %v594_v42, %v551_v28  ;;  %v2324_v47 = vmul.f32 0.0625, %v2674_v53 }
 0x17c   :  { %688 = vrot.lane.b32.xlu1 %v630_v6, %s1426_s21  ;;  %690 = vrot.lane.b32.xlu0 %v631_v2, %s1426_s21 }
 0x17d   :  { %v596_v9 = vpop.permute.xlu1 %595  ;;  %v598_v63 = vpop.permute.xlu0 %597 }
 0x17e   :  { %v632_v52 = vadd.f32 %v596_v9, %v552_v30  ;;  %v633_v48 = vadd.f32 %v598_v63, %v553_v13 }
 0x180   :  { %692 = vrot.lane.b32.xlu1 %v632_v52, %s1426_s21  ;;  %694 = vrot.lane.b32.xlu0 %v633_v48, %s1426_s21  ;;  %v879_v52 = vmul.f32 0.0625, %v2034_v60  ;;  %v883_v60 = vmul.f32 0.0625, %v2071_v37 }
 0x181   :  { %v600_v36 = vpop.permute.xlu1 %599  ;;  %v602_v40 = vpop.permute.xlu0 %601 }
 0x182   :  { %v634_v19 = vadd.f32 %v600_v36, %v554_v11  ;;  %v635_v10 = vadd.f32 %v602_v40, %v555_v18  ;;  %v882_v18 = vmul.f32 0.0625, %v2069_v35  ;;  %v2673_v35 = vld [vmem:[#allocation48_spill] sm:$0xff] }
 0x184   :  { %696 = vrot.lane.b32.xlu1 %v634_v19, %s1426_s21  ;;  %698 = vrot.lane.b32.xlu0 %v635_v10, %s1426_s21  ;;  %v884_v19 = vmul.f32 0.0625, %v2091_v27  ;;  %v885_v10 = vmul.f32 0.0625, %v2671_v16  ;;  %v2675_v27 = vld [vmem:[#allocation52_spill] sm:$0xff] }
 0x185   :  { %v604_v51 = vpop.permute.xlu1 %603  ;;  %v2240_v54 = vpop.permute.xlu0 %799  ;;  %v2327_v45 = vmul.f32 0.0625, %v2675_v27 }
 0x186   :  { %v636_v33 = vadd.f32 %v604_v51, %v556_v24  ;;  %v2672_v24 = vld [vmem:[#allocation47_spill] sm:$0xff]  ;;  %v847_v53 = vadd.f32 %v2240_v54, %v1902_v57 }
 0x187   :  { %v886_v51 = vmul.f32 0.0625, %v2672_v24 }
 0x188   :  { %700 = vrot.lane.b32.xlu1 %v636_v33, %s1426_s21  ;;  %1023 = vrot.lane.b32.xlu0 %v1902_v57, %s1425_s20  ;;  %v887_v33 = vmul.f32 0.0625, %v2673_v35  ;;  %v2676_v35 = vld [vmem:[#allocation55_spill] sm:$0xff]  ;;  %v895_v57 = vadd.f32 %v879_v52, %v847_v53 }
 0x189   :  { %v2245_v1 = vpop.permute.xlu1 %801  ;;  %v2247_v28 = vpop.permute.xlu0 %803  ;;  %v2334_v34 = vmul.f32 0.0625, %v2676_v35 }
 0x18a   :  { %v848_v32 = vadd.f32 %v2245_v1, %v1909_v58  ;;  %v849_v35 = vadd.f32 %v2247_v28, %v1912_v61 }
 0x18c   :  { %1025 = vrot.lane.b32.xlu1 %v1909_v58, %s1425_s20  ;;  %1027 = vrot.lane.b32.xlu0 %v1912_v61, %s1425_s20  ;;  %v896_v1 = vadd.f32 %v880_v59, %v848_v32  ;;  %v897_v61 = vadd.f32 %v881_v38, %v849_v35 }
 0x18d   :  { %v2253_v46 = vpop.permute.xlu1 %805  ;;  %v2255_v42 = vpop.permute.xlu0 %807 }
 0x18e   :  { %v850_v17 = vadd.f32 %v2253_v46, %v1919_v62  ;;  %v851_v58 = vadd.f32 %v2255_v42, %v1922_v0 }
 0x190   :  { %1029 = vrot.lane.b32.xlu1 %v1919_v62, %s1425_s20  ;;  %1031 = vrot.lane.b32.xlu0 %v1922_v0, %s1425_s20  ;;  %v899_v0 = vadd.f32 %v883_v60, %v851_v58 }
 0x191   :  { %v2261_v6 = vpop.permute.xlu1 %809  ;;  %v2263_v2 = vpop.permute.xlu0 %811 }
 0x192   :  { %v852_v21 = vadd.f32 %v2261_v6, %v1929_v3  ;;  %v853_v62 = vadd.f32 %v2263_v2, %v1932_v4 }
 0x194   :  { %1033 = vrot.lane.b32.xlu1 %v1929_v3, %s1425_s20  ;;  %1035 = vrot.lane.b32.xlu0 %v1932_v4, %s1425_s20 }
 0x195   :  { %v2269_v30 = vpop.permute.xlu1 %813  ;;  %v2271_v39 = vpop.permute.xlu0 %815 }
 0x198   :  { %1037 = vrot.lane.b32.xlu1 %v1939_v7, %s1425_s20  ;;  %1039 = vrot.lane.b32.xlu0 %v1942_v8, %s1425_s20 }
 0x199   :  { %v2277_v26 = vpop.permute.xlu1 %817  ;;  %v2279_v5 = vpop.permute.xlu0 %819 }
 0x19c   :  { %1041 = vrot.lane.b32.xlu1 %v1949_v12, %s1425_s20  ;;  %1043 = vrot.lane.b32.xlu0 %v1952_v56, %s1425_s20 }
 0x19d   :  { %v2285_v20 = vpop.permute.xlu1 %821  ;;  %v2287_v13 = vpop.permute.xlu0 %823 }
 0x1a0   :  { %1045 = vrot.lane.b32.xlu1 %v1959_v55, %s1425_s20  ;;  %1047 = vrot.lane.b32.xlu0 %v1962_v50, %s1425_s20 }
 0x1a1   :  { %v2293_v9 = vpop.permute.xlu1 %825  ;;  %v2299_v63 = vpop.permute.xlu0 %827 }
 0x1a4   :  { %1049 = vrot.lane.b32.xlu1 %v1969_v49, %s1425_s20  ;;  %1051 = vrot.lane.b32.xlu0 %v1972_v44, %s1425_s20 }
 0x1a5   :  { %v2305_v48 = vpop.permute.xlu1 %829  ;;  %v944_v11 = vpop.permute.xlu0 %943 }
 0x1a6   :  { %v991_v22 = vadd.f32 %v944_v11, %v895_v57  ;;  %v898_v57 = vadd.f32 %v882_v18, %v850_v17 }
 0x1a8   :  { %1053 = vrot.lane.b32.xlu1 %v1979_v43, %s1425_s20  ;;  %1119 = vrot.lane.b32.xlu0 %v879_v52, %s1425_s20 }
 0x1a9   :  { %v946_v36 = vpop.permute.xlu1 %945  ;;  %v948_v40 = vpop.permute.xlu0 %947 }
 0x1aa   :  { %v992_v52 = vadd.f32 %v946_v36, %v896_v1  ;;  %v993_v11 = vadd.f32 %v948_v40, %v897_v61  ;;  %v901_v36 = vadd.f32 %v885_v10, %v853_v62  ;;  %v857_v40 = vadd.f32 %v2279_v5, %v1952_v56 }
 0x1ac   :  { %1121 = vrot.lane.b32.xlu1 %v880_v59, %s1425_s20  ;;  %1123 = vrot.lane.b32.xlu0 %v881_v38, %s1425_s20  ;;  %v855_v38 = vadd.f32 %v2271_v39, %v1942_v8 }
 0x1ad   :  { %v950_v31 = vpop.permute.xlu1 %949  ;;  %v952_v37 = vpop.permute.xlu0 %951 }
 0x1ae   :  { %v994_v46 = vadd.f32 %v950_v31, %v898_v57  ;;  %v995_v42 = vadd.f32 %v952_v37, %v899_v0  ;;  %v859_v31 = vadd.f32 %v2287_v13, %v1962_v50  ;;  %v860_v50 = vadd.f32 %v2293_v9, %v1969_v49 }
 0x1af   :  { %v862_v49 = vadd.f32 %v2305_v48, %v1979_v43 }
 0x1b0   :  { %1125 = vrot.lane.b32.xlu1 %v882_v18, %s1425_s20  ;;  %1127 = vrot.lane.b32.xlu0 %v883_v60, %s1425_s20  ;;  %v900_v18 = vadd.f32 %v884_v19, %v852_v21  ;;  %v856_v60 = vadd.f32 %v2277_v26, %v1949_v12  ;;  %v905_v26 = vadd.f32 %v2327_v45, %v857_v40  ;;  %v2683_v40 = vld [vmem:[#allocation39_spill] sm:$0xff] }
 0x1b1   :  { %v954_v16 = vpop.permute.xlu1 %953  ;;  %v956_v24 = vpop.permute.xlu0 %955 }
 0x1b2   :  { %v996_v4 = vadd.f32 %v954_v16, %v900_v18  ;;  %v997_v6 = vadd.f32 %v956_v24, %v901_v36  ;;  %v904_v12 = vadd.f32 %v2324_v47, %v856_v60  ;;  %v2681_v18 = vld [vmem:[#allocation23_spill] sm:$0xff] }
 0x1b4   :  { %1129 = vrot.lane.b32.xlu1 %v884_v19, %s1425_s20  ;;  %1131 = vrot.lane.b32.xlu0 %v885_v10, %s1425_s20  ;;  %v858_v10 = vadd.f32 %v2285_v20, %v1959_v55  ;;  %v861_v55 = vadd.f32 %v2299_v63, %v1972_v44 }
 0x1b5   :  { %v958_v27 = vpop.permute.xlu1 %957  ;;  %v960_v54 = vpop.permute.xlu0 %959 }
 0x1b6   :  { %v906_v37 = vadd.f32 %v2334_v34, %v858_v10  ;;  %v909_v44 = vadd.f32 %v2349_v14, %v861_v55  ;;  %v2684_v10 = vld [vmem:[#allocation27_spill] sm:$0xff] }
 0x1b8   :  { %1133 = vrot.lane.b32.xlu1 %v886_v51, %s1425_s20  ;;  %1135 = vrot.lane.b32.xlu0 %v887_v33, %s1425_s20 }
 0x1b9   :  { %v962_v28 = vpop.permute.xlu1 %961  ;;  %v964_v53 = vpop.permute.xlu0 %963 }
 0x1ba   :  { %v1000_v56 = vadd.f32 %v962_v28, %v904_v12  ;;  %v1001_v5 = vadd.f32 %v964_v53, %v905_v26  ;;  %v2685_v12 = vld [vmem:[#allocation40_spill] sm:$0xff] }
 0x1bc   :  { %1137 = vrot.lane.b32.xlu1 %v2324_v47, %s1425_s20  ;;  %1139 = vrot.lane.b32.xlu0 %v2327_v45, %s1425_s20  ;;  %v907_v45 = vadd.f32 %v2337_v23, %v859_v31 }
 0x1bd   :  { %v966_v59 = vpop.permute.xlu1 %965  ;;  %v968_v3 = vpop.permute.xlu0 %967 }
 0x1be   :  { %v1002_v47 = vadd.f32 %v966_v59, %v906_v37  ;;  %v1003_v20 = vadd.f32 %v968_v3, %v907_v45  ;;  %v2688_v45 = vld [vmem:[#allocation28_spill] sm:$0xff] }
 0x1c0   :  { %1141 = vrot.lane.b32.xlu1 %v2334_v34, %s1425_s20  ;;  %1143 = vrot.lane.b32.xlu0 %v2337_v23, %s1425_s20  ;;  %v908_v34 = vadd.f32 %v2346_v29, %v860_v50  ;;  %v2687_v50 = vld [vmem:[#allocation42_spill] sm:$0xff] }
 0x1c1   :  { %v972_v19 = vpop.permute.xlu0 %971 }
 0x1c2   :  { %v1005_v9 = vadd.f32 %v972_v19, %v909_v44 }
 0x1c4   :  { %1145 = vrot.lane.b32.xlu1 %v2346_v29, %s1425_s20  ;;  %1147 = vrot.lane.b32.xlu0 %v2349_v14, %s1425_s20 }
 0x1c8   :  { %1149 = vrot.lane.b32.xlu1 %v2360_v15, %s1425_s20  ;;  %1199 = vrot.lane.b32.xlu0 %v991_v22, %s1427_s22  ;;  %v854_v22 = vadd.f32 %v2269_v30, %v1939_v7  ;;  %v903_v7 = vadd.f32 %v887_v33, %v855_v38  ;;  %v970_v30 = vpop.permute.xlu1 %969 }
 0x1c9   :  { %v1004_v23 = vadd.f32 %v970_v30, %v908_v34 }
 0x1ca   :  { %v902_v2 = vadd.f32 %v886_v51, %v854_v22  ;;  %v999_v39 = vadd.f32 %v960_v54, %v903_v7 }
 0x1cc   :  { %1201 = vrot.lane.b32.xlu1 %v992_v52, %s1427_s22  ;;  %1203 = vrot.lane.b32.xlu0 %v993_v11, %s1427_s22  ;;  %v998_v8 = vadd.f32 %v958_v27, %v902_v2  ;;  %v974_v51 = vpop.permute.xlu1 %973  ;;  %v910_v27 = vadd.f32 %v2360_v15, %v862_v49  ;;  %v2682_v2 = vld [vmem:[#allocation25_spill] sm:$0xff] }
 0x1ce   :  { %v1006_v43 = vadd.f32 %v974_v51, %v910_v27 }
 0x1d0   :  { %1205 = vrot.lane.b32.xlu1 %v994_v46, %s1427_s22  ;;  %1207 = vrot.lane.b32.xlu0 %v995_v42, %s1427_s22 }
 0x1d4   :  { %1209 = vrot.lane.b32.xlu1 %v996_v4, %s1427_s22  ;;  %1211 = vrot.lane.b32.xlu0 %v997_v6, %s1427_s22 }
 0x1d8   :  { %1213 = vrot.lane.b32.xlu1 %v998_v8, %s1427_s22  ;;  %1215 = vrot.lane.b32.xlu0 %v999_v39, %s1427_s22 }
 0x1da   :  { %v671_v33 = vpop.permute.xlu0 %670 }
 0x1db   :  { %719 = vst.msk [vmem:[#allocation6] sm:$0xff] %vm718_vm7, %v671_v33 }
 0x1dc   :  { %1217 = vrot.lane.b32.xlu1 %v1000_v56, %s1427_s22  ;;  %1219 = vrot.lane.b32.xlu0 %v1001_v5, %s1427_s22  ;;  %v2686_v56 = vld [vmem:[#allocation41_spill] sm:$0xff] }
 0x1de   :  { %v673_v13 = vpop.permute.xlu1 %672  ;;  %v675_v16 = vpop.permute.xlu0 %674 }
 0x1df   :  { %720 = vst.msk [vmem:[#allocation6 + $0x8] sm:$0xff] %vm718_vm7, %v673_v13  ;;  %721 = vst.msk [vmem:[#allocation6 + $0x10] sm:$0xff] %vm718_vm7, %v675_v16 }
 0x1e0   :  { %1221 = vrot.lane.b32.xlu1 %v1002_v47, %s1427_s22  ;;  %1223 = vrot.lane.b32.xlu0 %v1003_v20, %s1427_s22  ;;  %v2689_v20 = vld [vmem:[#allocation29_spill] sm:$0xff] }
 0x1e2   :  { %v677_v63 = vpop.permute.xlu1 %676  ;;  %v679_v24 = vpop.permute.xlu0 %678 }
 0x1e3   :  { %722 = vst.msk [vmem:[#allocation6 + $0x18] sm:$0xff] %vm718_vm7, %v677_v63  ;;  %723 = vst.msk [vmem:[#allocation6 + $0x20] sm:$0xff] %vm718_vm7, %v679_v24  ;;  %v2692_v24 = vld [vmem:[#allocation31_spill] sm:$0xff] }
 0x1e4   :  { %1225 = vrot.lane.b32.xlu1 %v1004_v23, %s1427_s22  ;;  %1227 = vrot.lane.b32.xlu0 %v1005_v9, %s1427_s22  ;;  %v2691_v9 = vld [vmem:[#allocation30_spill] sm:$0xff] }
 0x1e6   :  { %v681_v14 = vpop.permute.xlu1 %680  ;;  %v683_v29 = vpop.permute.xlu0 %682 }
 0x1e7   :  { %724 = vst.msk [vmem:[#allocation6 + $0x28] sm:$0xff] %vm718_vm7, %v681_v14  ;;  %725 = vst.msk [vmem:[#allocation6 + $0x30] sm:$0xff] %vm718_vm7, %v683_v29  ;;  %v2694_v29 = vld [vmem:[#allocation46_spill] sm:$0xff] }
 0x1e8   :  { %1229 = vrot.lane.b32.xlu1 %v1006_v43, %s1427_s22  ;;  %v2693_v43 = vld [vmem:[#allocation45_spill] sm:$0xff] }
 0x1ea   :  { %v685_v48 = vpop.permute.xlu1 %684  ;;  %v687_v32 = vpop.permute.xlu0 %686 }
 0x1eb   :  { %726 = vst.msk [vmem:[#allocation6 + $0x38] sm:$0xff] %vm718_vm7, %v685_v48  ;;  %727 = vst.msk [vmem:[#allocation6 + $0x40] sm:$0xff] %vm718_vm7, %v687_v32 }
 0x1ee   :  { %v689_v15 = vpop.permute.xlu1 %688  ;;  %v691_v35 = vpop.permute.xlu0 %690 }
 0x1ef   :  { %728 = vst.msk [vmem:[#allocation6 + $0x48] sm:$0xff] %vm718_vm7, %v689_v15  ;;  %729 = vst.msk [vmem:[#allocation6 + $0x50] sm:$0xff] %vm718_vm7, %v691_v35 }
 0x1f2   :  { %v693_v54 = vpop.permute.xlu1 %692  ;;  %v695_v17 = vpop.permute.xlu0 %694 }
 0x1f3   :  { %730 = vst.msk [vmem:[#allocation6 + $0x58] sm:$0xff] %vm718_vm7, %v693_v54  ;;  %731 = vst.msk [vmem:[#allocation6 + $0x60] sm:$0xff] %vm718_vm7, %v695_v17  ;;  %v2695_v17 = vld [vmem:[#allocation49_spill] sm:$0xff] }
 0x1f6   :  { %v697_v58 = vpop.permute.xlu1 %696  ;;  %v699_v1 = vpop.permute.xlu0 %698 }
 0x1f7   :  { %732 = vst.msk [vmem:[#allocation6 + $0x68] sm:$0xff] %vm718_vm7, %v697_v58  ;;  %733 = vst.msk [vmem:[#allocation6 + $0x70] sm:$0xff] %vm718_vm7, %v699_v1  ;;  %v2696_v1 = vld [vmem:[#allocation32_spill] sm:$0xff] }
 0x1fa   :  { %v701_v61 = vpop.permute.xlu1 %700  ;;  %v1024_v28 = vpop.permute.xlu0 %1023 }
 0x1fb   :  { %734 = vst.msk [vmem:[#allocation6 + $0x78] sm:$0xff] %vm718_vm7, %v701_v61  ;;  %v1071_v36 = vadd.f32 %v1024_v28, %v2681_v18  ;;  %v2697_v28 = vld [vmem:[#allocation33_spill] sm:$0xff] }
 0x1fd   :  { %v1087_v7 = vadd.f32 %v1071_v36, %v2683_v40  ;;  %v2700_v36 = vld [vmem:[#allocation35_spill] sm:$0xff] }
 0x1fe   :  { %v1026_v52 = vpop.permute.xlu1 %1025  ;;  %v1028_v11 = vpop.permute.xlu0 %1027 }
 0x1ff   :  { %v1072_v6 = vadd.f32 %v1026_v52, %v2653_v25  ;;  %v1073_v60 = vadd.f32 %v1028_v11, %v2682_v2  ;;  %v2698_v11 = vld [vmem:[#allocation50_spill] sm:$0xff] }
 0x200   :  { %v2702_v2 = vld [vmem:[#allocation54_spill] sm:$0xff] }
 0x201   :  { %v1088_v26 = vadd.f32 %v1072_v6, %v2685_v12  ;;  %v1089_v5 = vadd.f32 %v1073_v60, %v2686_v56 }
 0x202   :  { %v1030_v53 = vpop.permute.xlu1 %1029  ;;  %v1032_v57 = vpop.permute.xlu0 %1031 }
 0x203   :  { %v1074_v19 = vadd.f32 %v1030_v53, %v2655_v41  ;;  %v1075_v31 = vadd.f32 %v1032_v57, %v2684_v10  ;;  %v2690_v41 = vld [vmem:[#allocation43_spill] sm:$0xff] }
 0x205   :  { %v1090_v55 = vadd.f32 %v1074_v19, %v2687_v50  ;;  %v1091_v16 = vadd.f32 %v1075_v31, %v2690_v41  ;;  %v2703_v19 = vld [vmem:[#allocation57_spill] sm:$0xff]  ;;  %v2704_v31 = vld [vmem:[#allocation36_spill] sm:$0xff] }
 0x206   :  { %v1034_v21 = vpop.permute.xlu1 %1033  ;;  %v1036_v62 = vpop.permute.xlu0 %1035 }
 0x207   :  { %v1076_v47 = vadd.f32 %v1034_v21, %v2688_v45  ;;  %v1077_v13 = vadd.f32 %v1036_v62, %v2689_v20 }
 0x209   :  { %v1092_v14 = vadd.f32 %v1076_v47, %v2693_v43  ;;  %v1093_v48 = vadd.f32 %v1077_v13, %v2694_v29 }
 0x20a   :  { %v1038_v0 = vpop.permute.xlu1 %1037  ;;  %v1040_v46 = vpop.permute.xlu0 %1039 }
 0x20b   :  { %v1078_v63 = vadd.f32 %v1038_v0, %v2691_v9  ;;  %v1079_v27 = vadd.f32 %v1040_v46, %v2692_v24  ;;  %v2699_v46 = vld [vmem:[#allocation34_spill] sm:$0xff] }
 0x20d   :  { %v1094_v58 = vadd.f32 %v1078_v63, %v2695_v17  ;;  %v1095_v53 = vadd.f32 %v1079_v27, %v2698_v11 }
 0x20e   :  { %v1042_v42 = vpop.permute.xlu1 %1041  ;;  %v1044_v59 = vpop.permute.xlu0 %1043 }
 0x20f   :  { %v1080_v61 = vadd.f32 %v1042_v42, %v2696_v1  ;;  %v1081_v52 = vadd.f32 %v1044_v59, %v2697_v28  ;;  %v2701_v42 = vld [vmem:[#allocation53_spill] sm:$0xff] }
 0x211   :  { %v1096_v59 = vadd.f32 %v1080_v61, %v2701_v42  ;;  %v1097_v60 = vadd.f32 %v1081_v52, %v2702_v2 }
 0x212   :  { %v1046_v22 = vpop.permute.xlu1 %1045  ;;  %v1048_v38 = vpop.permute.xlu0 %1047 }
 0x213   :  { %v1082_v18 = vadd.f32 %v1046_v22, %v2699_v46  ;;  %v1083_v6 = vadd.f32 %v1048_v38, %v2700_v36  ;;  %v2706_v38 = vld [vmem:[#allocation58_spill] sm:$0xff] }
 0x215   :  { %v1098_v10 = vadd.f32 %v1082_v18, %v2703_v19  ;;  %v1099_v56 = vadd.f32 %v1083_v6, %v2706_v38 }
 0x216   :  { %v1050_v3 = vpop.permute.xlu1 %1049  ;;  %v1052_v4 = vpop.permute.xlu0 %1051 }
 0x217   :  { %v1084_v12 = vadd.f32 %v1050_v3, %v2704_v31  ;;  %v2708_v3 = vld [vmem:[#allocation61_spill] sm:$0xff] }
 0x21a   :  { %v2433_v30 = vpop.permute.xlu1 %1053  ;;  %v1120_v8 = vpop.permute.xlu0 %1119 }
 0x21b   :  { %v1167_v39 = vadd.f32 %v1120_v8, %v1087_v7 }
 0x21d   :  { %1280 = vrot.lane.b32.xlu0 %v1167_v39, %s1428_s23 }
 0x21e   :  { %v1122_v25 = vpop.permute.xlu1 %1121  ;;  %v1124_v51 = vpop.permute.xlu0 %1123 }
 0x21f   :  { %v1168_v33 = vadd.f32 %v1122_v25, %v1088_v26  ;;  %v1169_v37 = vadd.f32 %v1124_v51, %v1089_v5  ;;  %v2705_v26 = vld [vmem:[#allocation37_spill] sm:$0xff] }
 0x220   :  { %v1085_v22 = vadd.f32 %v1052_v4, %v2705_v26  ;;  %v2709_v4 = vld [vmem:[#allocation62_spill] sm:$0xff] }
 0x221   :  { %1282 = vrot.lane.b32.xlu1 %v1168_v33, %s1428_s23  ;;  %1284 = vrot.lane.b32.xlu0 %v1169_v37, %s1428_s23  ;;  %v2707_v37 = vld [vmem:[#allocation38_spill] sm:$0xff] }
 0x222   :  { %v1126_v49 = vpop.permute.xlu1 %1125  ;;  %v1128_v34 = vpop.permute.xlu0 %1127  ;;  %v1086_v50 = vadd.f32 %v2433_v30, %v2707_v37  ;;  %v1101_v45 = vadd.f32 %v1085_v22, %v2709_v4 }
 0x223   :  { %v1170_v44 = vadd.f32 %v1126_v49, %v1090_v55  ;;  %v1171_v23 = vadd.f32 %v1128_v34, %v1091_v16  ;;  %v1100_v55 = vadd.f32 %v1084_v12, %v2708_v3  ;;  %v2710_v16 = vld [vmem:[#allocation64_spill] sm:$0xff] }
 0x224   :  { %v1102_v49 = vadd.f32 %v1086_v50, %v2710_v16 }
 0x225   :  { %1286 = vrot.lane.b32.xlu1 %v1170_v44, %s1428_s23  ;;  %1288 = vrot.lane.b32.xlu0 %v1171_v23, %s1428_s23 }
 0x226   :  { %v1130_v32 = vpop.permute.xlu1 %1129  ;;  %v1132_v15 = vpop.permute.xlu0 %1131 }
 0x227   :  { %v1172_v35 = vadd.f32 %v1130_v32, %v1092_v14  ;;  %v1173_v54 = vadd.f32 %v1132_v15, %v1093_v48 }
 0x229   :  { %1290 = vrot.lane.b32.xlu1 %v1172_v35, %s1428_s23  ;;  %1292 = vrot.lane.b32.xlu0 %v1173_v54, %s1428_s23 }
 0x22a   :  { %v1134_v57 = vpop.permute.xlu1 %1133  ;;  %v1136_v21 = vpop.permute.xlu0 %1135 }
 0x22b   :  { %v1174_v62 = vadd.f32 %v1134_v57, %v1094_v58  ;;  %v1175_v0 = vadd.f32 %v1136_v21, %v1095_v53 }
 0x22d   :  { %1294 = vrot.lane.b32.xlu1 %v1174_v62, %s1428_s23  ;;  %1296 = vrot.lane.b32.xlu0 %v1175_v0, %s1428_s23 }
 0x22e   :  { %v1138_v40 = vpop.permute.xlu1 %1137  ;;  %v1140_v7 = vpop.permute.xlu0 %1139 }
 0x22f   :  { %v1176_v8 = vadd.f32 %v1138_v40, %v1096_v59  ;;  %v1177_v39 = vadd.f32 %v1140_v7, %v1097_v60 }
 0x231   :  { %1298 = vrot.lane.b32.xlu1 %v1176_v8, %s1428_s23  ;;  %1300 = vrot.lane.b32.xlu0 %v1177_v39, %s1428_s23 }
 0x232   :  { %v1142_v5 = vpop.permute.xlu1 %1141  ;;  %v1144_v25 = vpop.permute.xlu0 %1143 }
 0x233   :  { %v1178_v51 = vadd.f32 %v1142_v5, %v1098_v10  ;;  %v1179_v33 = vadd.f32 %v1144_v25, %v1099_v56 }
 0x235   :  { %1302 = vrot.lane.b32.xlu1 %v1178_v51, %s1428_s23  ;;  %1304 = vrot.lane.b32.xlu0 %v1179_v33, %s1428_s23 }
 0x236   :  { %v1146_v47 = vpop.permute.xlu1 %1145  ;;  %v1148_v20 = vpop.permute.xlu0 %1147 }
 0x237   :  { %v1180_v13 = vadd.f32 %v1146_v47, %v1100_v55  ;;  %v1181_v41 = vadd.f32 %v1148_v20, %v1101_v45 }
 0x239   :  { %1306 = vrot.lane.b32.xlu1 %v1180_v13, %s1428_s23  ;;  %1308 = vrot.lane.b32.xlu0 %v1181_v41, %s1428_s23 }
 0x23a   :  { %v1150_v30 = vpop.permute.xlu1 %1149  ;;  %v1200_v34 = vpop.permute.xlu0 %1199 }
 0x23b   :  { %v1182_v44 = vadd.f32 %v1150_v30, %v1102_v49  ;;  %1248 = vst.msk [vmem:[#allocation6] sm:$0xff] %vm1247_vm8, %v1200_v34 }
 0x23d   :  { %1310 = vrot.lane.b32.xlu1 %v1182_v44, %s1428_s23 }
 0x23e   :  { %v1202_v23 = vpop.permute.xlu1 %1201  ;;  %v1204_v9 = vpop.permute.xlu0 %1203 }
 0x23f   :  { %1249 = vst.msk [vmem:[#allocation6 + $0x8] sm:$0xff] %vm1247_vm8, %v1202_v23  ;;  %1250 = vst.msk [vmem:[#allocation6 + $0x10] sm:$0xff] %vm1247_vm8, %v1204_v9 }
 0x242   :  { %v1206_v63 = vpop.permute.xlu1 %1205  ;;  %v1208_v24 = vpop.permute.xlu0 %1207 }
 0x243   :  { %1251 = vst.msk [vmem:[#allocation6 + $0x18] sm:$0xff] %vm1247_vm8, %v1206_v63  ;;  %1252 = vst.msk [vmem:[#allocation6 + $0x20] sm:$0xff] %vm1247_vm8, %v1208_v24 }
 0x246   :  { %v1210_v27 = vpop.permute.xlu1 %1209  ;;  %v1212_v43 = vpop.permute.xlu0 %1211 }
 0x247   :  { %1253 = vst.msk [vmem:[#allocation6 + $0x28] sm:$0xff] %vm1247_vm8, %v1210_v27  ;;  %1254 = vst.msk [vmem:[#allocation6 + $0x30] sm:$0xff] %vm1247_vm8, %v1212_v43 }
 0x24a   :  { %v1214_v14 = vpop.permute.xlu1 %1213  ;;  %v1216_v29 = vpop.permute.xlu0 %1215 }
 0x24b   :  { %1255 = vst.msk [vmem:[#allocation6 + $0x38] sm:$0xff] %vm1247_vm8, %v1214_v14  ;;  %1256 = vst.msk [vmem:[#allocation6 + $0x40] sm:$0xff] %vm1247_vm8, %v1216_v29 }
 0x24e   :  { %v1218_v48 = vpop.permute.xlu1 %1217  ;;  %v1220_v32 = vpop.permute.xlu0 %1219 }
 0x24f   :  { %1257 = vst.msk [vmem:[#allocation6 + $0x48] sm:$0xff] %vm1247_vm8, %v1218_v48  ;;  %1258 = vst.msk [vmem:[#allocation6 + $0x50] sm:$0xff] %vm1247_vm8, %v1220_v32 }
 0x252   :  { %v1222_v15 = vpop.permute.xlu1 %1221  ;;  %v1224_v35 = vpop.permute.xlu0 %1223 }
 0x253   :  { %1259 = vst.msk [vmem:[#allocation6 + $0x58] sm:$0xff] %vm1247_vm8, %v1222_v15  ;;  %1260 = vst.msk [vmem:[#allocation6 + $0x60] sm:$0xff] %vm1247_vm8, %v1224_v35 }
 0x256   :  { %v1226_v54 = vpop.permute.xlu1 %1225  ;;  %v1228_v17 = vpop.permute.xlu0 %1227 }
 0x257   :  { %1261 = vst.msk [vmem:[#allocation6 + $0x68] sm:$0xff] %vm1247_vm8, %v1226_v54  ;;  %1262 = vst.msk [vmem:[#allocation6 + $0x70] sm:$0xff] %vm1247_vm8, %v1228_v17 }
 0x25a   :  { %v1230_v58 = vpop.permute.xlu1 %1229 }
 0x25b   :  { %1263 = vst.msk [vmem:[#allocation6 + $0x78] sm:$0xff] %vm1247_vm8, %v1230_v58 }
 0x28f   :  { %v1281_v1 = vpop.permute.xlu0 %1280 }
 0x290   :  { %1329 = vst.msk [vmem:[#allocation6] sm:$0xff] %vm1328_vm9, %v1281_v1 }
 0x293   :  { %v1283_v61 = vpop.permute.xlu1 %1282  ;;  %v1285_v28 = vpop.permute.xlu0 %1284 }
 0x294   :  { %1330 = vst.msk [vmem:[#allocation6 + $0x8] sm:$0xff] %vm1328_vm9, %v1283_v61  ;;  %1331 = vst.msk [vmem:[#allocation6 + $0x10] sm:$0xff] %vm1328_vm9, %v1285_v28 }
 0x297   :  { %v1287_v52 = vpop.permute.xlu1 %1286  ;;  %v1289_v11 = vpop.permute.xlu0 %1288 }
 0x298   :  { %1332 = vst.msk [vmem:[#allocation6 + $0x18] sm:$0xff] %vm1328_vm9, %v1287_v52  ;;  %1333 = vst.msk [vmem:[#allocation6 + $0x20] sm:$0xff] %vm1328_vm9, %v1289_v11 }
 0x29b   :  { %v1291_v53 = vpop.permute.xlu1 %1290  ;;  %v1293_v57 = vpop.permute.xlu0 %1292 }
 0x29c   :  { %1334 = vst.msk [vmem:[#allocation6 + $0x28] sm:$0xff] %vm1328_vm9, %v1291_v53  ;;  %1335 = vst.msk [vmem:[#allocation6 + $0x30] sm:$0xff] %vm1328_vm9, %v1293_v57 }
 0x29f   :  { %v1295_v21 = vpop.permute.xlu1 %1294  ;;  %v1297_v62 = vpop.permute.xlu0 %1296 }
 0x2a0   :  { %1336 = vst.msk [vmem:[#allocation6 + $0x38] sm:$0xff] %vm1328_vm9, %v1295_v21  ;;  %1337 = vst.msk [vmem:[#allocation6 + $0x40] sm:$0xff] %vm1328_vm9, %v1297_v62 }
 0x2a3   :  { %v1299_v0 = vpop.permute.xlu1 %1298  ;;  %v1301_v46 = vpop.permute.xlu0 %1300 }
 0x2a4   :  { %1338 = vst.msk [vmem:[#allocation6 + $0x48] sm:$0xff] %vm1328_vm9, %v1299_v0  ;;  %1339 = vst.msk [vmem:[#allocation6 + $0x50] sm:$0xff] %vm1328_vm9, %v1301_v46 }
 0x2a7   :  { %v1303_v18 = vpop.permute.xlu1 %1302  ;;  %v1305_v36 = vpop.permute.xlu0 %1304 }
 0x2a8   :  { %1340 = vst.msk [vmem:[#allocation6 + $0x58] sm:$0xff] %vm1328_vm9, %v1303_v18  ;;  %1341 = vst.msk [vmem:[#allocation6 + $0x60] sm:$0xff] %vm1328_vm9, %v1305_v36 }
 0x2ab   :  { %v1307_v6 = vpop.permute.xlu1 %1306  ;;  %v1309_v42 = vpop.permute.xlu0 %1308 }
 0x2ac   :  { %1342 = vst.msk [vmem:[#allocation6 + $0x68] sm:$0xff] %vm1328_vm9, %v1307_v6  ;;  %1343 = vst.msk [vmem:[#allocation6 + $0x70] sm:$0xff] %vm1328_vm9, %v1309_v42 }
 0x2af   :  { %v1311_v59 = vpop.permute.xlu1 %1310 }
 0x2b0   :  { %1344 = vst.msk [vmem:[#allocation6 + $0x78] sm:$0xff] %vm1328_vm9, %v1311_v59 }
 0x2b1   :  { %1405 = shalt.err (!%p1402_p12)
}
 0x2b2   :  { %s1406_s29 = scalar_lea.hbm %s2528_s1, 2048 }
 0x2b3   :  { %p1407_p13 = scmp.ne.s32.totalorder %s2528_s1, %s1406_s29  ;;  %p1410_p0 = scmp.lt.u32.totalorder %s1406_s29, %s2528_s1 }
 0x2b5   :  { %p1412_p1 = pnand %p1410_p0, %p1407_p13 }
 0x2b7   :  { %1415 = shalt.err (!%p1412_p1)
}
 0x2b8   :  { %1356 = dma.vmem_to_hbm [thread:$0]  %s1351_s25, 2048, %s2528_s1, [#allocation5], %s1421_s16, %s1421_s16, %s1422_s17  }
 0x2b9   :  { %1418 = dma.done.wait [#allocation5], 2048  }
 0x2ba   :  { %1419 = vsyncadd [#allocation5], 4294965248 }
 0x2bb   :  { %1360 = vsyncpa [#allocation4], 1 }
 0x2bc   :  { %1361 = vsyncpa [#allocation5], 1 }

</bundles_post_ra>
